<compile_context>
chip_gen: v5e
topology: v5e:2x2
jax: 0.10.0
libtpu: 0.0.40
codegen_flags: <defaults>
</compile_context>

<pallas_src>
import functools

import jax
import jax.numpy as jnp
from jax.experimental import pallas as pl
from jax.experimental.pallas import tpu as pltpu

_LANE = 128
_F32_SUBLANE = 8
_STAGE_THRESHOLD_BYTES = 128 * 1024       # f32 acc size above which we N-chunk + stage
_VMEM_HEADROOM_BYTES = 16 * 1024 * 1024   # leave room for Mosaic internal scratch


def _round_up(n: int, m: int) -> int:
    return ((n + m - 1) // m) * m


def _vmem_capacity_bytes() -> int:
    try:
        return int(pltpu.get_tpu_info().vmem_capacity_bytes)
    except Exception:
        return 64 * 1024 * 1024  # conservative: v7x per-TensorCore VMEM


def _make_spec(block_shape, index_map, buffer_count=None):
    """BlockSpec with optional explicit buffer count (1 for resident weights)."""
    if buffer_count is None:
        return pl.BlockSpec(block_shape, index_map)
    return pl.BlockSpec(block_shape, index_map, pipeline_mode=pl.Buffered(buffer_count))


def _pick_tile_m(batch: int, requested: int, sub: int, target_steps: int = 8) -> int:
    """Pick a row-tile that yields several grid steps (megacore + DMA overlap)."""
    requested = max(sub, _round_up(requested, sub))
    tm = _round_up(max(1, -(-batch // target_steps)), sub)
    return min(tm, requested)


def _pick_divisor_tile(p: int, target: int) -> int:
    """Largest multiple of 128 that divides p and is <= target (p % 128 == 0)."""
    if p <= target:
        return p
    best = _LANE
    t = _LANE
    while t <= target:
        if p % t == 0:
            best = t
        t += _LANE
    return best


# ---------------------------------------------------------------------------
# Fused path: all (padded) weights VMEM-resident, grid over row tiles.
# ---------------------------------------------------------------------------
def _fused_mlp_kernel(num_linear, widths, compute_dtype, n_chunk, chunked, *refs):
    """refs = (x, w1, b1, ..., wN, bN, out, [scratch0, scratch1])."""
    x_ref = refs[0]
    wb = refs[1:1 + 2 * num_linear]
    out_ref = refs[1 + 2 * num_linear]
    scratch = refs[2 + 2 * num_linear:]

    h = x_ref[...]                                    # (tile_m, widths[0]) compute_dtype
    for i in range(num_linear):
        w_ref, b_ref = wb[2 * i], wb[2 * i + 1]
        pout = widths[i + 1]
        last = i == num_linear - 1

        if not chunked[i]:
            # Small layer: whole f32 accumulator fits comfortably; keep the
            # activation in vregs (no scratch store/load round trip).
            acc = jnp.dot(h, w_ref[...], preferred_element_type=jnp.float32)
            acc = acc + b_ref[...].astype(jnp.float32)
            if last:
                out_ref[...] = acc.astype(out_ref.dtype)
            else:
                h = jnp.maximum(acc, 0.0).astype(compute_dtype)
        else:
            # Large layer: N-chunk to bound vreg live ranges (no f32 spill),
            # staging chunks through VMEM scratch / output.
            dst_ref = out_ref if last else scratch[i % 2]
            for n0 in range(0, pout, n_chunk):
                cn = min(n_chunk, pout - n0)
                acc = jnp.dot(h, w_ref[:, n0:n0 + cn],
                              preferred_element_type=jnp.float32)
                acc = acc + b_ref[:, n0:n0 + cn].astype(jnp.float32)
                if not last:
                    acc = jnp.maximum(acc, 0.0)
                dst_ref[:, n0:n0 + cn] = acc.astype(dst_ref.dtype)
            if not last:
                h = dst_ref[:, :pout]


# ---------------------------------------------------------------------------
# Streaming fallback: one pallas_call per layer, weight streamed in N-tiles.
# ---------------------------------------------------------------------------
def _streaming_layer_kernel(apply_relu, x_ref, w_ref, b_ref, out_ref):
    acc = jnp.dot(x_ref[...], w_ref[...], preferred_element_type=jnp.float32)
    acc = acc + b_ref[...].astype(jnp.float32)
    if apply_relu:
        acc = jnp.maximum(acc, 0.0)
    out_ref[...] = acc.astype(out_ref.dtype)


def _run_streaming(x_p, padded, pdims, compute_dtype, out_dtype, tile_m, m_pad,
                   vmem_budget):
    num_linear = len(padded)
    c_item = jnp.dtype(compute_dtype).itemsize
    h = x_p
    for li, (w_p, b_p) in enumerate(padded):
        pin, pout = pdims[li], pdims[li + 1]
        last = li == num_linear - 1
        layer_dtype = out_dtype if last else compute_dtype
        l_item = jnp.dtype(layer_dtype).itemsize
        tile_n = _pick_divisor_tile(pout, 512)
        grid = (m_pad // tile_m, pout // tile_n)

        vmem_needed = (2 * tile_m * pin * c_item      # x tile (re-used across j)
                       + 2 * pin * tile_n * c_item    # streamed weight tile
                       + 2 * tile_n * 4               # bias tile
                       + 2 * tile_m * tile_n * l_item)
        vmem_limit = int(min(vmem_budget, max(int(1.25 * vmem_needed),
                                              32 * 1024 * 1024)))

        h = pl.pallas_call(
            functools.partial(_streaming_layer_kernel, not last),
            out_shape=jax.ShapeDtypeStruct((m_pad, pout), layer_dtype),
            grid=grid,
            in_specs=[pl.BlockSpec((tile_m, pin), lambda i, j: (i, 0)),
                      pl.BlockSpec((pin, tile_n), lambda i, j: (0, j)),
                      pl.BlockSpec((1, tile_n), lambda i, j: (0, j))],
            out_specs=pl.BlockSpec((tile_m, tile_n), lambda i, j: (i, j)),
            compiler_params=pltpu.CompilerParams(
                dimension_semantics=("parallel", "arbitrary"),
                vmem_limit_bytes=vmem_limit),
            cost_estimate=pl.CostEstimate(
                flops=2 * m_pad * pin * pout, transcendentals=0,
                bytes_accessed=(m_pad * pin * c_item + pin * pout * c_item
                                + m_pad * pout * l_item)),
        )(h, w_p, b_p)
    return h


# ---------------------------------------------------------------------------
# Wrappers
# ---------------------------------------------------------------------------
def prepare_mlp_params(params, *, use_bf16=True):
    """Pad + cast weights ONCE (hoist out of the per-step forward).

    params: list of (W, b), W shaped (in, out) (already transposed from the
            PyTorch (out, in) layout), b shaped (out,).
    """
    compute_dtype = jnp.bfloat16 if use_bf16 else jnp.float32
    # v6e/v7x MXU is 2x256x256 -> pad to 256 for bf16; 128 is optimal for f32/v5e.
    pad_mult = 256 if use_bf16 else _LANE

    dims = [params[0][0].shape[0]] + [w.shape[1] for w, _ in params]
    pdims = [_round_up(d, pad_mult) for d in dims]

    padded = []
    for li, (w, b) in enumerate(params):
        pin, pout = pdims[li], pdims[li + 1]
        w_p = jnp.zeros((pin, pout), compute_dtype)
        w_p = w_p.at[:w.shape[0], :w.shape[1]].set(w.astype(compute_dtype))
        b_p = jnp.zeros((1, pout), jnp.float32)
        b_p = b_p.at[0, :b.shape[-1]].set(b.reshape(-1).astype(jnp.float32))
        padded.append((w_p, b_p))

    return {"padded": padded, "dims": tuple(dims), "pdims": tuple(pdims),
            "compute_dtype": compute_dtype, "pad_mult": pad_mult}


def mlp_forward_prepared(x, prep, *, tile_m=256, n_chunk=512,
                         out_dtype=jnp.float32):
    padded = prep["padded"]
    dims, pdims = prep["dims"], prep["pdims"]
    compute_dtype = prep["compute_dtype"]
    num_linear = len(padded)

    batch, in_features = x.shape
    assert in_features == dims[0], (in_features, dims[0])
    out_features = dims[-1]

    c_item = jnp.dtype(compute_dtype).itemsize
    o_item = jnp.dtype(out_dtype).itemsize
    sub = 16 if c_item == 2 else _F32_SUBLANE

    tile_m = _pick_tile_m(batch, tile_m, sub)
    m_pad = _round_up(batch, tile_m)
    n_chunk = _round_up(n_chunk, prep["pad_mult"])

    x_p = jnp.zeros((m_pad, pdims[0]), compute_dtype)
    x_p = x_p.at[:batch, :in_features].set(x.astype(compute_dtype))

    vmem_budget = max(_vmem_capacity_bytes() - _VMEM_HEADROOM_BYTES,
                      16 * 1024 * 1024)

    weight_bytes = sum(int(w.size) * w.dtype.itemsize + int(b.size) * b.dtype.itemsize
                       for w, b in padded)
    # Per-layer: stage/N-chunk only when the f32 accumulator tile is large.
    chunked = tuple(tile_m * pdims[i + 1] * 4 > _STAGE_THRESHOLD_BYTES
                    for i in range(num_linear))
    stage_widths = [pdims[i + 1] for i in range(num_linear - 1) if chunked[i]]
    max_stage = max(stage_widths) if stage_widths else 0

    act_bytes = 2 * tile_m * pdims[0] * c_item + 2 * tile_m * pdims[-1] * o_item
    scratch_bytes = 2 * tile_m * max_stage * c_item
    fused_vmem = weight_bytes + act_bytes + scratch_bytes  # weights single-buffered

    if fused_vmem <= 0.7 * vmem_budget:
        def run_fused(weight_buffer_count):
            flat = []
            in_specs = [pl.BlockSpec((tile_m, pdims[0]), lambda i: (i, 0))]
            for li, (w_p, b_p) in enumerate(padded):
                pin, pout = pdims[li], pdims[li + 1]
                flat.extend([w_p, b_p])
                # Constant index_map -> DMA'd once, VMEM-resident across grid.
                in_specs.append(_make_spec((pin, pout), lambda i: (0, 0),
                                           weight_buffer_count))
                in_specs.append(_make_spec((1, pout), lambda i: (0, 0),
                                           weight_buffer_count))
            scratch_shapes = ([pltpu.VMEM((tile_m, max_stage), compute_dtype)] * 2
                              if max_stage else [])
            need = fused_vmem + (weight_bytes if weight_buffer_count is None else 0)
            vmem_limit = int(min(vmem_budget, max(int(1.25 * need),
                                                  32 * 1024 * 1024)))
            flops = sum(2 * m_pad * pdims[i] * pdims[i + 1]
                        for i in range(num_linear))
            bytes_accessed = (m_pad * pdims[0] * c_item + weight_bytes
                              + m_pad * pdims[-1] * o_item)
            kernel = functools.partial(_fused_mlp_kernel, num_linear, tuple(pdims),
                                       compute_dtype, n_chunk, chunked)
            return pl.pallas_call(
                kernel,
                out_shape=jax.ShapeDtypeStruct((m_pad, pdims[-1]), out_dtype),
                grid=(m_pad // tile_m,),
                in_specs=in_specs,
                out_specs=pl.BlockSpec((tile_m, pdims[-1]), lambda i: (i, 0)),
                scratch_shapes=scratch_shapes,
                compiler_params=pltpu.CompilerParams(
                    dimension_semantics=("parallel",),  # shard row tiles across TCs
                    vmem_limit_bytes=vmem_limit),
                cost_estimate=pl.CostEstimate(flops=flops, transcendentals=0,
                                              bytes_accessed=bytes_accessed),
            )(x_p, *flat)

        try:
            out_p = run_fused(1)        # single-buffered resident weights
        except Exception:
            out_p = run_fused(None)     # fallback if Buffered(1) is unsupported
    else:
        # Weights too big for resident VMEM (e.g. hidden=8192 on v7x): stream.
        out_p = _run_streaming(x_p, padded, pdims, compute_dtype, out_dtype,
                               tile_m, m_pad, vmem_budget)

    # Slice the real rows/columns out of the lane-dense padded slab.
    return out_p[:batch, :out_features]


def mlp_forward(x, params, *, use_bf16=True, **kw):
    """Convenience wrapper. Prefer prepare_mlp_params() once + mlp_forward_prepared()."""
    return mlp_forward_prepared(x, prepare_mlp_params(params, use_bf16=use_bf16), **kw)


# ---------------------------------------------------------------------------
# Init + reference (mirrors torch MLPModel)
# ---------------------------------------------------------------------------
def init_mlp_params(key, input_size, output_size, hidden_size, num_layers):
    """Deterministic init matching torch.nn.Linear default U(-1/sqrt(in), +)."""
    dims = [(input_size, hidden_size)]
    dims += [(hidden_size, hidden_size)] * (num_layers - 1)
    dims += [(hidden_size, output_size)]
    params = []
    for fan_in, fan_out in dims:
        key, kw, kb = jax.random.split(key, 3)
        bound = 1.0 / jnp.sqrt(jnp.float32(fan_in))
        w_t = jax.random.uniform(kw, (fan_in, fan_out), jnp.float32, -bound, bound)
        b = jax.random.uniform(kb, (fan_out,), jnp.float32, -bound, bound)
        params.append((w_t, b))
    return params


def mlp_reference(x, params):
    h = x
    n = len(params)
    for i, (w, b) in enumerate(params):
        h = h @ w + b
        if i < n - 1:
            h = jnp.maximum(h, 0.0)
    return h


if __name__ == "__main__":
    batch = 2
    input_size = 16
    output_size = 8
    hidden_size = 32
    num_layers = 5  # -> 6 Linear layers total

    key = jax.random.PRNGKey(0)
    key, kx = jax.random.split(key)
    x = jax.random.normal(kx, (batch, input_size), jnp.float32)
    params = init_mlp_params(key, input_size, output_size, hidden_size, num_layers)
    ref = mlp_reference(x, params)

    # f32 path: tight check against the reference.
    prep_f32 = prepare_mlp_params(params, use_bf16=False)
    out_f32 = jax.block_until_ready(mlp_forward_prepared(x, prep_f32))
    assert out_f32.shape == (batch, output_size), out_f32.shape
    assert jnp.allclose(out_f32, ref, atol=1e-4, rtol=1e-4), "f32 mismatch vs reference"

    # bf16 path (default for real use): tolerance-checked against the reference.
    prep_bf16 = prepare_mlp_params(params, use_bf16=True)
    out_bf16 = jax.block_until_ready(mlp_forward_prepared(x, prep_bf16))
    assert out_bf16.shape == (batch, output_size), out_bf16.shape
    assert jnp.allclose(out_bf16, ref, atol=5e-2, rtol=5e-2), "bf16 mismatch vs reference"

    print("KERNEL_OK")
</pallas_src>

<mosaic_0001>
module attributes {stable_mosaic.version = 11 : i64} {
  func.func @_fused_mlp_kernel(%arg0: i32, %arg1: memref<8x128xf32, #tpu.memory_space<vmem>>, %arg2: memref<128x128xf32, #tpu.memory_space<vmem>>, %arg3: memref<1x128xf32, #tpu.memory_space<vmem>>, %arg4: memref<128x128xf32, #tpu.memory_space<vmem>>, %arg5: memref<1x128xf32, #tpu.memory_space<vmem>>, %arg6: memref<128x128xf32, #tpu.memory_space<vmem>>, %arg7: memref<1x128xf32, #tpu.memory_space<vmem>>, %arg8: memref<128x128xf32, #tpu.memory_space<vmem>>, %arg9: memref<1x128xf32, #tpu.memory_space<vmem>>, %arg10: memref<128x128xf32, #tpu.memory_space<vmem>>, %arg11: memref<1x128xf32, #tpu.memory_space<vmem>>, %arg12: memref<128x128xf32, #tpu.memory_space<vmem>>, %arg13: memref<1x128xf32, #tpu.memory_space<vmem>>, %arg14: memref<8x128xf32, #tpu.memory_space<vmem>>) attributes {dimension_semantics = [#tpu.dimension_semantics<parallel>], iteration_bounds = array<i64: 1>, scalar_prefetch = 0 : i64, scratch_operands = 0 : i64, tpu.core_type = #tpu.core_type<tc>, window_params = [{transform_indices = @transform_0, window_bounds = array<i64: 8, 128>}, {pipeline_mode = #tpu.pipeline_mode<synchronous>, transform_indices = @transform_1, window_bounds = array<i64: 128, 128>}, {pipeline_mode = #tpu.pipeline_mode<synchronous>, transform_indices = @transform_2, window_bounds = array<i64: 1, 128>}, {pipeline_mode = #tpu.pipeline_mode<synchronous>, transform_indices = @transform_3, window_bounds = array<i64: 128, 128>}, {pipeline_mode = #tpu.pipeline_mode<synchronous>, transform_indices = @transform_4, window_bounds = array<i64: 1, 128>}, {pipeline_mode = #tpu.pipeline_mode<synchronous>, transform_indices = @transform_5, window_bounds = array<i64: 128, 128>}, {pipeline_mode = #tpu.pipeline_mode<synchronous>, transform_indices = @transform_6, window_bounds = array<i64: 1, 128>}, {pipeline_mode = #tpu.pipeline_mode<synchronous>, transform_indices = @transform_7, window_bounds = array<i64: 128, 128>}, {pipeline_mode = #tpu.pipeline_mode<synchronous>, transform_indices = @transform_8, window_bounds = array<i64: 1, 128>}, {pipeline_mode = #tpu.pipeline_mode<synchronous>, transform_indices = @transform_9, window_bounds = array<i64: 128, 128>}, {pipeline_mode = #tpu.pipeline_mode<synchronous>, transform_indices = @transform_10, window_bounds = array<i64: 1, 128>}, {pipeline_mode = #tpu.pipeline_mode<synchronous>, transform_indices = @transform_11, window_bounds = array<i64: 128, 128>}, {pipeline_mode = #tpu.pipeline_mode<synchronous>, transform_indices = @transform_12, window_bounds = array<i64: 1, 128>}, {transform_indices = @transform_13, window_bounds = array<i64: 8, 128>}]} {
    %c0 = arith.constant 0 : index
    %c0_0 = arith.constant 0 : index
    %0 = vector.load %arg1[%c0, %c0_0] : memref<8x128xf32, #tpu.memory_space<vmem>>, vector<8x128xf32>
    %c0_1 = arith.constant 0 : index
    %c0_2 = arith.constant 0 : index
    %1 = vector.load %arg2[%c0_1, %c0_2] : memref<128x128xf32, #tpu.memory_space<vmem>>, vector<128x128xf32>
    %cst = arith.constant dense<0.000000e+00> : vector<8x128xf32>
    %2 = tpu.matmul %0, %1, %cst {dimension_numbers = #tpu.dot_dimension_numbers<[1], [0], [0], [1], [0, 0, 1, 1], [], []>} : vector<8x128xf32>, vector<128x128xf32>, vector<8x128xf32> -> vector<8x128xf32>
    %c0_3 = arith.constant 0 : index
    %c0_4 = arith.constant 0 : index
    %3 = vector.load %arg3[%c0_3, %c0_4] : memref<1x128xf32, #tpu.memory_space<vmem>>, vector<1x128xf32>
    %4 = vector.broadcast %3 : vector<1x128xf32> to vector<8x128xf32>
    %5 = arith.addf %2, %4 : vector<8x128xf32>
    %cst_5 = arith.constant 0.000000e+00 : f32
    %6 = vector.broadcast %cst_5 : f32 to vector<8x128xf32>
    %7 = arith.maximumf %5, %6 : vector<8x128xf32>
    %c0_6 = arith.constant 0 : index
    %c0_7 = arith.constant 0 : index
    %8 = vector.load %arg4[%c0_6, %c0_7] : memref<128x128xf32, #tpu.memory_space<vmem>>, vector<128x128xf32>
    %cst_8 = arith.constant dense<0.000000e+00> : vector<8x128xf32>
    %9 = tpu.matmul %7, %8, %cst_8 {dimension_numbers = #tpu.dot_dimension_numbers<[1], [0], [0], [1], [0, 0, 1, 1], [], []>} : vector<8x128xf32>, vector<128x128xf32>, vector<8x128xf32> -> vector<8x128xf32>
    %c0_9 = arith.constant 0 : index
    %c0_10 = arith.constant 0 : index
    %10 = vector.load %arg5[%c0_9, %c0_10] : memref<1x128xf32, #tpu.memory_space<vmem>>, vector<1x128xf32>
    %11 = vector.broadcast %10 : vector<1x128xf32> to vector<8x128xf32>
    %12 = arith.addf %9, %11 : vector<8x128xf32>
    %cst_11 = arith.constant 0.000000e+00 : f32
    %13 = vector.broadcast %cst_11 : f32 to vector<8x128xf32>
    %14 = arith.maximumf %12, %13 : vector<8x128xf32>
    %c0_12 = arith.constant 0 : index
    %c0_13 = arith.constant 0 : index
    %15 = vector.load %arg6[%c0_12, %c0_13] : memref<128x128xf32, #tpu.memory_space<vmem>>, vector<128x128xf32>
    %cst_14 = arith.constant dense<0.000000e+00> : vector<8x128xf32>
    %16 = tpu.matmul %14, %15, %cst_14 {dimension_numbers = #tpu.dot_dimension_numbers<[1], [0], [0], [1], [0, 0, 1, 1], [], []>} : vector<8x128xf32>, vector<128x128xf32>, vector<8x128xf32> -> vector<8x128xf32>
    %c0_15 = arith.constant 0 : index
    %c0_16 = arith.constant 0 : index
    %17 = vector.load %arg7[%c0_15, %c0_16] : memref<1x128xf32, #tpu.memory_space<vmem>>, vector<1x128xf32>
    %18 = vector.broadcast %17 : vector<1x128xf32> to vector<8x128xf32>
    %19 = arith.addf %16, %18 : vector<8x128xf32>
    %cst_17 = arith.constant 0.000000e+00 : f32
    %20 = vector.broadcast %cst_17 : f32 to vector<8x128xf32>
    %21 = arith.maximumf %19, %20 : vector<8x128xf32>
    %c0_18 = arith.constant 0 : index
    %c0_19 = arith.constant 0 : index
    %22 = vector.load %arg8[%c0_18, %c0_19] : memref<128x128xf32, #tpu.memory_space<vmem>>, vector<128x128xf32>
    %cst_20 = arith.constant dense<0.000000e+00> : vector<8x128xf32>
    %23 = tpu.matmul %21, %22, %cst_20 {dimension_numbers = #tpu.dot_dimension_numbers<[1], [0], [0], [1], [0, 0, 1, 1], [], []>} : vector<8x128xf32>, vector<128x128xf32>, vector<8x128xf32> -> vector<8x128xf32>
    %c0_21 = arith.constant 0 : index
    %c0_22 = arith.constant 0 : index
    %24 = vector.load %arg9[%c0_21, %c0_22] : memref<1x128xf32, #tpu.memory_space<vmem>>, vector<1x128xf32>
    %25 = vector.broadcast %24 : vector<1x128xf32> to vector<8x128xf32>
    %26 = arith.addf %23, %25 : vector<8x128xf32>
    %cst_23 = arith.constant 0.000000e+00 : f32
    %27 = vector.broadcast %cst_23 : f32 to vector<8x128xf32>
    %28 = arith.maximumf %26, %27 : vector<8x128xf32>
    %c0_24 = arith.constant 0 : index
    %c0_25 = arith.constant 0 : index
    %29 = vector.load %arg10[%c0_24, %c0_25] : memref<128x128xf32, #tpu.memory_space<vmem>>, vector<128x128xf32>
    %cst_26 = arith.constant dense<0.000000e+00> : vector<8x128xf32>
    %30 = tpu.matmul %28, %29, %cst_26 {dimension_numbers = #tpu.dot_dimension_numbers<[1], [0], [0], [1], [0, 0, 1, 1], [], []>} : vector<8x128xf32>, vector<128x128xf32>, vector<8x128xf32> -> vector<8x128xf32>
    %c0_27 = arith.constant 0 : index
    %c0_28 = arith.constant 0 : index
    %31 = vector.load %arg11[%c0_27, %c0_28] : memref<1x128xf32, #tpu.memory_space<vmem>>, vector<1x128xf32>
    %32 = vector.broadcast %31 : vector<1x128xf32> to vector<8x128xf32>
    %33 = arith.addf %30, %32 : vector<8x128xf32>
    %cst_29 = arith.constant 0.000000e+00 : f32
    %34 = vector.broadcast %cst_29 : f32 to vector<8x128xf32>
    %35 = arith.maximumf %33, %34 : vector<8x128xf32>
    %c0_30 = arith.constant 0 : index
    %c0_31 = arith.constant 0 : index
    %36 = vector.load %arg12[%c0_30, %c0_31] : memref<128x128xf32, #tpu.memory_space<vmem>>, vector<128x128xf32>
    %cst_32 = arith.constant dense<0.000000e+00> : vector<8x128xf32>
    %37 = tpu.matmul %35, %36, %cst_32 {dimension_numbers = #tpu.dot_dimension_numbers<[1], [0], [0], [1], [0, 0, 1, 1], [], []>} : vector<8x128xf32>, vector<128x128xf32>, vector<8x128xf32> -> vector<8x128xf32>
    %c0_33 = arith.constant 0 : index
    %c0_34 = arith.constant 0 : index
    %38 = vector.load %arg13[%c0_33, %c0_34] : memref<1x128xf32, #tpu.memory_space<vmem>>, vector<1x128xf32>
    %39 = vector.broadcast %38 : vector<1x128xf32> to vector<8x128xf32>
    %40 = arith.addf %37, %39 : vector<8x128xf32>
    %c0_35 = arith.constant 0 : index
    %c0_36 = arith.constant 0 : index
    %41 = vector.load %arg14[%c0_35, %c0_36] : memref<8x128xf32, #tpu.memory_space<vmem>>, vector<8x128xf32>
    tpu.vector_store %arg14[%c0_35, %c0_36], %40 {strides = array<i32>} : memref<8x128xf32, #tpu.memory_space<vmem>>, vector<8x128xf32>,
    return
  }
  func.func @transform_0(%arg0: i32) -> (i32, i32) {
    %c0_i32 = arith.constant 0 : i32
    %c0_i32_0 = arith.constant 0 : i32
    return %arg0, %c0_i32 : i32, i32
  }
  func.func @transform_1(%arg0: i32) -> (i32, i32) {
    %c0_i32 = arith.constant 0 : i32
    %c0_i32_0 = arith.constant 0 : i32
    %c0_i32_1 = arith.constant 0 : i32
    return %c0_i32, %c0_i32_0 : i32, i32
  }
  func.func @transform_2(%arg0: i32) -> (i32, i32) {
    %c0_i32 = arith.constant 0 : i32
    %c0_i32_0 = arith.constant 0 : i32
    %c0_i32_1 = arith.constant 0 : i32
    return %c0_i32, %c0_i32_0 : i32, i32
  }
  func.func @transform_3(%arg0: i32) -> (i32, i32) {
    %c0_i32 = arith.constant 0 : i32
    %c0_i32_0 = arith.constant 0 : i32
    %c0_i32_1 = arith.constant 0 : i32
    return %c0_i32, %c0_i32_0 : i32, i32
  }
  func.func @transform_4(%arg0: i32) -> (i32, i32) {
    %c0_i32 = arith.constant 0 : i32
    %c0_i32_0 = arith.constant 0 : i32
    %c0_i32_1 = arith.constant 0 : i32
    return %c0_i32, %c0_i32_0 : i32, i32
  }
  func.func @transform_5(%arg0: i32) -> (i32, i32) {
    %c0_i32 = arith.constant 0 : i32
    %c0_i32_0 = arith.constant 0 : i32
    %c0_i32_1 = arith.constant 0 : i32
    return %c0_i32, %c0_i32_0 : i32, i32
  }
  func.func @transform_6(%arg0: i32) -> (i32, i32) {
    %c0_i32 = arith.constant 0 : i32
    %c0_i32_0 = arith.constant 0 : i32
    %c0_i32_1 = arith.constant 0 : i32
    return %c0_i32, %c0_i32_0 : i32, i32
  }
  func.func @transform_7(%arg0: i32) -> (i32, i32) {
    %c0_i32 = arith.constant 0 : i32
    %c0_i32_0 = arith.constant 0 : i32
    %c0_i32_1 = arith.constant 0 : i32
    return %c0_i32, %c0_i32_0 : i32, i32
  }
  func.func @transform_8(%arg0: i32) -> (i32, i32) {
    %c0_i32 = arith.constant 0 : i32
    %c0_i32_0 = arith.constant 0 : i32
    %c0_i32_1 = arith.constant 0 : i32
    return %c0_i32, %c0_i32_0 : i32, i32
  }
  func.func @transform_9(%arg0: i32) -> (i32, i32) {
    %c0_i32 = arith.constant 0 : i32
    %c0_i32_0 = arith.constant 0 : i32
    %c0_i32_1 = arith.constant 0 : i32
    return %c0_i32, %c0_i32_0 : i32, i32
  }
  func.func @transform_10(%arg0: i32) -> (i32, i32) {
    %c0_i32 = arith.constant 0 : i32
    %c0_i32_0 = arith.constant 0 : i32
    %c0_i32_1 = arith.constant 0 : i32
    return %c0_i32, %c0_i32_0 : i32, i32
  }
  func.func @transform_11(%arg0: i32) -> (i32, i32) {
    %c0_i32 = arith.constant 0 : i32
    %c0_i32_0 = arith.constant 0 : i32
    %c0_i32_1 = arith.constant 0 : i32
    return %c0_i32, %c0_i32_0 : i32, i32
  }
  func.func @transform_12(%arg0: i32) -> (i32, i32) {
    %c0_i32 = arith.constant 0 : i32
    %c0_i32_0 = arith.constant 0 : i32
    %c0_i32_1 = arith.constant 0 : i32
    return %c0_i32, %c0_i32_0 : i32, i32
  }
  func.func @transform_13(%arg0: i32) -> (i32, i32) {
    %c0_i32 = arith.constant 0 : i32
    %c0_i32_0 = arith.constant 0 : i32
    return %arg0, %c0_i32 : i32, i32
  }
}

module attributes {stable_mosaic.version = 11 : i64} {
  func.func @_fused_mlp_kernel(%arg0: i32, %arg1: memref<8x128xf32, #tpu.memory_space<vmem>>, %arg2: memref<128x128xf32, #tpu.memory_space<vmem>>, %arg3: memref<1x128xf32, #tpu.memory_space<vmem>>, %arg4: memref<128x128xf32, #tpu.memory_space<vmem>>, %arg5: memref<1x128xf32, #tpu.memory_space<vmem>>, %arg6: memref<128x128xf32, #tpu.memory_space<vmem>>, %arg7: memref<1x128xf32, #tpu.memory_space<vmem>>, %arg8: memref<128x128xf32, #tpu.memory_space<vmem>>, %arg9: memref<1x128xf32, #tpu.memory_space<vmem>>, %arg10: memref<128x128xf32, #tpu.memory_space<vmem>>, %arg11: memref<1x128xf32, #tpu.memory_space<vmem>>, %arg12: memref<128x128xf32, #tpu.memory_space<vmem>>, %arg13: memref<1x128xf32, #tpu.memory_space<vmem>>, %arg14: memref<8x128xf32, #tpu.memory_space<vmem>>) attributes {dimension_semantics = [#tpu.dimension_semantics<parallel>], iteration_bounds = array<i64: 1>, scalar_prefetch = 0 : i64, scratch_operands = 0 : i64, tpu.core_type = #tpu.core_type<tc>, window_params = [{transform_indices = @transform_0, window_bounds = array<i64: 8, 128>}, {pipeline_mode = #tpu.pipeline_mode<synchronous>, transform_indices = @transform_1, window_bounds = array<i64: 128, 128>}, {pipeline_mode = #tpu.pipeline_mode<synchronous>, transform_indices = @transform_2, window_bounds = array<i64: 1, 128>}, {pipeline_mode = #tpu.pipeline_mode<synchronous>, transform_indices = @transform_3, window_bounds = array<i64: 128, 128>}, {pipeline_mode = #tpu.pipeline_mode<synchronous>, transform_indices = @transform_4, window_bounds = array<i64: 1, 128>}, {pipeline_mode = #tpu.pipeline_mode<synchronous>, transform_indices = @transform_5, window_bounds = array<i64: 128, 128>}, {pipeline_mode = #tpu.pipeline_mode<synchronous>, transform_indices = @transform_6, window_bounds = array<i64: 1, 128>}, {pipeline_mode = #tpu.pipeline_mode<synchronous>, transform_indices = @transform_7, window_bounds = array<i64: 128, 128>}, {pipeline_mode = #tpu.pipeline_mode<synchronous>, transform_indices = @transform_8, window_bounds = array<i64: 1, 128>}, {pipeline_mode = #tpu.pipeline_mode<synchronous>, transform_indices = @transform_9, window_bounds = array<i64: 128, 128>}, {pipeline_mode = #tpu.pipeline_mode<synchronous>, transform_indices = @transform_10, window_bounds = array<i64: 1, 128>}, {pipeline_mode = #tpu.pipeline_mode<synchronous>, transform_indices = @transform_11, window_bounds = array<i64: 128, 128>}, {pipeline_mode = #tpu.pipeline_mode<synchronous>, transform_indices = @transform_12, window_bounds = array<i64: 1, 128>}, {transform_indices = @transform_13, window_bounds = array<i64: 8, 128>}]} {
    %c0 = arith.constant 0 : index
    %c0_0 = arith.constant 0 : index
    %0 = vector.load %arg1[%c0, %c0_0] : memref<8x128xf32, #tpu.memory_space<vmem>>, vector<8x128xf32>
    %c0_1 = arith.constant 0 : index
    %c0_2 = arith.constant 0 : index
    %1 = vector.load %arg2[%c0_1, %c0_2] : memref<128x128xf32, #tpu.memory_space<vmem>>, vector<128x128xf32>
    %cst = arith.constant dense<0.000000e+00> : vector<8x128xf32>
    %2 = tpu.matmul %0, %1, %cst {dimension_numbers = #tpu.dot_dimension_numbers<[1], [0], [0], [1], [0, 0, 1, 1], [], []>} : vector<8x128xf32>, vector<128x128xf32>, vector<8x128xf32> -> vector<8x128xf32>
    %c0_3 = arith.constant 0 : index
    %c0_4 = arith.constant 0 : index
    %3 = vector.load %arg3[%c0_3, %c0_4] : memref<1x128xf32, #tpu.memory_space<vmem>>, vector<1x128xf32>
    %4 = vector.broadcast %3 : vector<1x128xf32> to vector<8x128xf32>
    %5 = arith.addf %2, %4 : vector<8x128xf32>
    %cst_5 = arith.constant 0.000000e+00 : f32
    %6 = vector.broadcast %cst_5 : f32 to vector<8x128xf32>
    %7 = arith.maximumf %5, %6 : vector<8x128xf32>
    %c0_6 = arith.constant 0 : index
    %c0_7 = arith.constant 0 : index
    %8 = vector.load %arg4[%c0_6, %c0_7] : memref<128x128xf32, #tpu.memory_space<vmem>>, vector<128x128xf32>
    %cst_8 = arith.constant dense<0.000000e+00> : vector<8x128xf32>
    %9 = tpu.matmul %7, %8, %cst_8 {dimension_numbers = #tpu.dot_dimension_numbers<[1], [0], [0], [1], [0, 0, 1, 1], [], []>} : vector<8x128xf32>, vector<128x128xf32>, vector<8x128xf32> -> vector<8x128xf32>
    %c0_9 = arith.constant 0 : index
    %c0_10 = arith.constant 0 : index
    %10 = vector.load %arg5[%c0_9, %c0_10] : memref<1x128xf32, #tpu.memory_space<vmem>>, vector<1x128xf32>
    %11 = vector.broadcast %10 : vector<1x128xf32> to vector<8x128xf32>
    %12 = arith.addf %9, %11 : vector<8x128xf32>
    %cst_11 = arith.constant 0.000000e+00 : f32
    %13 = vector.broadcast %cst_11 : f32 to vector<8x128xf32>
    %14 = arith.maximumf %12, %13 : vector<8x128xf32>
    %c0_12 = arith.constant 0 : index
    %c0_13 = arith.constant 0 : index
    %15 = vector.load %arg6[%c0_12, %c0_13] : memref<128x128xf32, #tpu.memory_space<vmem>>, vector<128x128xf32>
    %cst_14 = arith.constant dense<0.000000e+00> : vector<8x128xf32>
    %16 = tpu.matmul %14, %15, %cst_14 {dimension_numbers = #tpu.dot_dimension_numbers<[1], [0], [0], [1], [0, 0, 1, 1], [], []>} : vector<8x128xf32>, vector<128x128xf32>, vector<8x128xf32> -> vector<8x128xf32>
    %c0_15 = arith.constant 0 : index
    %c0_16 = arith.constant 0 : index
    %17 = vector.load %arg7[%c0_15, %c0_16] : memref<1x128xf32, #tpu.memory_space<vmem>>, vector<1x128xf32>
    %18 = vector.broadcast %17 : vector<1x128xf32> to vector<8x128xf32>
    %19 = arith.addf %16, %18 : vector<8x128xf32>
    %cst_17 = arith.constant 0.000000e+00 : f32
    %20 = vector.broadcast %cst_17 : f32 to vector<8x128xf32>
    %21 = arith.maximumf %19, %20 : vector<8x128xf32>
    %c0_18 = arith.constant 0 : index
    %c0_19 = arith.constant 0 : index
    %22 = vector.load %arg8[%c0_18, %c0_19] : memref<128x128xf32, #tpu.memory_space<vmem>>, vector<128x128xf32>
    %cst_20 = arith.constant dense<0.000000e+00> : vector<8x128xf32>
    %23 = tpu.matmul %21, %22, %cst_20 {dimension_numbers = #tpu.dot_dimension_numbers<[1], [0], [0], [1], [0, 0, 1, 1], [], []>} : vector<8x128xf32>, vector<128x128xf32>, vector<8x128xf32> -> vector<8x128xf32>
    %c0_21 = arith.constant 0 : index
    %c0_22 = arith.constant 0 : index
    %24 = vector.load %arg9[%c0_21, %c0_22] : memref<1x128xf32, #tpu.memory_space<vmem>>, vector<1x128xf32>
    %25 = vector.broadcast %24 : vector<1x128xf32> to vector<8x128xf32>
    %26 = arith.addf %23, %25 : vector<8x128xf32>
    %cst_23 = arith.constant 0.000000e+00 : f32
    %27 = vector.broadcast %cst_23 : f32 to vector<8x128xf32>
    %28 = arith.maximumf %26, %27 : vector<8x128xf32>
    %c0_24 = arith.constant 0 : index
    %c0_25 = arith.constant 0 : index
    %29 = vector.load %arg10[%c0_24, %c0_25] : memref<128x128xf32, #tpu.memory_space<vmem>>, vector<128x128xf32>
    %cst_26 = arith.constant dense<0.000000e+00> : vector<8x128xf32>
    %30 = tpu.matmul %28, %29, %cst_26 {dimension_numbers = #tpu.dot_dimension_numbers<[1], [0], [0], [1], [0, 0, 1, 1], [], []>} : vector<8x128xf32>, vector<128x128xf32>, vector<8x128xf32> -> vector<8x128xf32>
    %c0_27 = arith.constant 0 : index
    %c0_28 = arith.constant 0 : index
    %31 = vector.load %arg11[%c0_27, %c0_28] : memref<1x128xf32, #tpu.memory_space<vmem>>, vector<1x128xf32>
    %32 = vector.broadcast %31 : vector<1x128xf32> to vector<8x128xf32>
    %33 = arith.addf %30, %32 : vector<8x128xf32>
    %cst_29 = arith.constant 0.000000e+00 : f32
    %34 = vector.broadcast %cst_29 : f32 to vector<8x128xf32>
    %35 = arith.maximumf %33, %34 : vector<8x128xf32>
    %c0_30 = arith.constant 0 : index
    %c0_31 = arith.constant 0 : index
    %36 = vector.load %arg12[%c0_30, %c0_31] : memref<128x128xf32, #tpu.memory_space<vmem>>, vector<128x128xf32>
    %cst_32 = arith.constant dense<0.000000e+00> : vector<8x128xf32>
    %37 = tpu.matmul %35, %36, %cst_32 {dimension_numbers = #tpu.dot_dimension_numbers<[1], [0], [0], [1], [0, 0, 1, 1], [], []>} : vector<8x128xf32>, vector<128x128xf32>, vector<8x128xf32> -> vector<8x128xf32>
    %c0_33 = arith.constant 0 : index
    %c0_34 = arith.constant 0 : index
    %38 = vector.load %arg13[%c0_33, %c0_34] : memref<1x128xf32, #tpu.memory_space<vmem>>, vector<1x128xf32>
    %39 = vector.broadcast %38 : vector<1x128xf32> to vector<8x128xf32>
    %40 = arith.addf %37, %39 : vector<8x128xf32>
    %c0_35 = arith.constant 0 : index
    %c0_36 = arith.constant 0 : index
    %41 = vector.load %arg14[%c0_35, %c0_36] : memref<8x128xf32, #tpu.memory_space<vmem>>, vector<8x128xf32>
    tpu.vector_store %arg14[%c0_35, %c0_36], %40 {strides = array<i32>} : memref<8x128xf32, #tpu.memory_space<vmem>>, vector<8x128xf32>,
    return
  }
  func.func @transform_0(%arg0: i32) -> (i32, i32) {
    %c0_i32 = arith.constant 0 : i32
    %c0_i32_0 = arith.constant 0 : i32
    return %arg0, %c0_i32 : i32, i32
  }
  func.func @transform_1(%arg0: i32) -> (i32, i32) {
    %c0_i32 = arith.constant 0 : i32
    %c0_i32_0 = arith.constant 0 : i32
    %c0_i32_1 = arith.constant 0 : i32
    return %c0_i32, %c0_i32_0 : i32, i32
  }
  func.func @transform_2(%arg0: i32) -> (i32, i32) {
    %c0_i32 = arith.constant 0 : i32
    %c0_i32_0 = arith.constant 0 : i32
    %c0_i32_1 = arith.constant 0 : i32
    return %c0_i32, %c0_i32_0 : i32, i32
  }
  func.func @transform_3(%arg0: i32) -> (i32, i32) {
    %c0_i32 = arith.constant 0 : i32
    %c0_i32_0 = arith.constant 0 : i32
    %c0_i32_1 = arith.constant 0 : i32
    return %c0_i32, %c0_i32_0 : i32, i32
  }
  func.func @transform_4(%arg0: i32) -> (i32, i32) {
    %c0_i32 = arith.constant 0 : i32
    %c0_i32_0 = arith.constant 0 : i32
    %c0_i32_1 = arith.constant 0 : i32
    return %c0_i32, %c0_i32_0 : i32, i32
  }
  func.func @transform_5(%arg0: i32) -> (i32, i32) {
    %c0_i32 = arith.constant 0 : i32
    %c0_i32_0 = arith.constant 0 : i32
    %c0_i32_1 = arith.constant 0 : i32
    return %c0_i32, %c0_i32_0 : i32, i32
  }
  func.func @transform_6(%arg0: i32) -> (i32, i32) {
    %c0_i32 = arith.constant 0 : i32
    %c0_i32_0 = arith.constant 0 : i32
    %c0_i32_1 = arith.constant 0 : i32
    return %c0_i32, %c0_i32_0 : i32, i32
  }
  func.func @transform_7(%arg0: i32) -> (i32, i32) {
    %c0_i32 = arith.constant 0 : i32
    %c0_i32_0 = arith.constant 0 : i32
    %c0_i32_1 = arith.constant 0 : i32
    return %c0_i32, %c0_i32_0 : i32, i32
  }
  func.func @transform_8(%arg0: i32) -> (i32, i32) {
    %c0_i32 = arith.constant 0 : i32
    %c0_i32_0 = arith.constant 0 : i32
    %c0_i32_1 = arith.constant 0 : i32
    return %c0_i32, %c0_i32_0 : i32, i32
  }
  func.func @transform_9(%arg0: i32) -> (i32, i32) {
    %c0_i32 = arith.constant 0 : i32
    %c0_i32_0 = arith.constant 0 : i32
    %c0_i32_1 = arith.constant 0 : i32
    return %c0_i32, %c0_i32_0 : i32, i32
  }
  func.func @transform_10(%arg0: i32) -> (i32, i32) {
    %c0_i32 = arith.constant 0 : i32
    %c0_i32_0 = arith.constant 0 : i32
    %c0_i32_1 = arith.constant 0 : i32
    return %c0_i32, %c0_i32_0 : i32, i32
  }
  func.func @transform_11(%arg0: i32) -> (i32, i32) {
    %c0_i32 = arith.constant 0 : i32
    %c0_i32_0 = arith.constant 0 : i32
    %c0_i32_1 = arith.constant 0 : i32
    return %c0_i32, %c0_i32_0 : i32, i32
  }
  func.func @transform_12(%arg0: i32) -> (i32, i32) {
    %c0_i32 = arith.constant 0 : i32
    %c0_i32_0 = arith.constant 0 : i32
    %c0_i32_1 = arith.constant 0 : i32
    return %c0_i32, %c0_i32_0 : i32, i32
  }
  func.func @transform_13(%arg0: i32) -> (i32, i32) {
    %c0_i32 = arith.constant 0 : i32
    %c0_i32_0 = arith.constant 0 : i32
    return %arg0, %c0_i32 : i32, i32
  }
}

</mosaic_0001>

<bundles_post_ra>
// kernel: tpu_custom_call.1
= control target key start
LH: loop header
LB: loop body
LE: loop exit
PB: predicated region body
PF: predicated region fallthrough
CT: control target
= control target key end

     0   :  { %18 = vsyncpa [#allocation3], 0  ;;  %s777_s0 = inlined_call_operand.hbm [shape: f32[8,128], index: 0, kind: input, shape index: {}]   ;;  %s778_s1 = inlined_call_operand.hbm [shape: f32[128,128], index: 1, kind: input, shape index: {}]   ;;  %s779_s2 = inlined_call_operand.vmem [shape: f32[1,128], index: 2, kind: input, shape index: {}]   ;;  %s780_s3 = inlined_call_operand.hbm [shape: f32[128,128], index: 3, kind: input, shape index: {}]   ;;  %s781_s4 = inlined_call_operand.vmem [shape: f32[1,128], index: 4, kind: input, shape index: {}]   ;;  %s782_s5 = inlined_call_operand.hbm [shape: f32[128,128], index: 5, kind: input, shape index: {}]   ;;  %s783_s6 = inlined_call_operand.vmem [shape: f32[1,128], index: 6, kind: input, shape index: {}]   ;;  %s784_s7 = inlined_call_operand.hbm [shape: f32[128,128], index: 7, kind: input, shape index: {}]   ;;  %s785_s8 = inlined_call_operand.vmem [shape: f32[1,128], index: 8, kind: input, shape index: {}]   ;;  %s786_s9 = inlined_call_operand.hbm [shape: f32[128,128], index: 9, kind: input, shape index: {}]   ;;  %s787_s10 = inlined_call_operand.vmem [shape: f32[1,128], index: 10, kind: input, shape index: {}]   ;;  %s788_s11 = inlined_call_operand.hbm [shape: f32[128,128], index: 11, kind: input, shape index: {}]   ;;  %s789_s12 = inlined_call_operand.vmem [shape: f32[1,128], index: 12, kind: input, shape index: {}]   ;;  %s790_s13 = inlined_call_operand.hbm [shape: f32[8,128], index: 13, kind: output, shape index: {}]  }
   0x1   :  { %19 = vsyncpa [#allocation6], 0 }
   0x2   :  { %20 = vsyncpa [#allocation9], 0 }
   0x3   :  { %21 = vsyncpa [#allocation12], 0  ;;  %s38_s27 = sshll.u32 %s778_s1, 4  ;;  %s39_s27 = int_to_ptr.hbm [resolvable:$true] %s38_s27 }
   0x4   :  { %22 = vsyncpa [#allocation4], 0  ;;  %s637_s28 = smov [#allocation5]   ;;  %s68_s15 = sshll.u32 %s782_s5, 4  ;;  %s69_s15 = int_to_ptr.hbm [resolvable:$true] %s68_s15 }
   0x5   :  { %s40_s29 = sshll.u32 %s637_s28, 4  ;;  %s638_s16 = smov 128   ;;  %s41_s29 = int_to_ptr.vmem [resolvable:$true] %s40_s29 }
   0x6   :  { %s639_s17 = smov 8   ;;  %s640_s18 = smov [#allocation8]  }
   0x7   :  { %46 = dma.hbm_to_vmem [thread:$0]  %s39_s27, 2048, %s41_s29, [#allocation6], %s638_s16, %s638_s16, %s639_s17  }
   0x8   :  { %s70_s19 = sshll.u32 %s640_s18, 4  ;;  %s98_s21 = sshll.u32 %s786_s9, 4  ;;  %s71_s19 = int_to_ptr.vmem [resolvable:$true] %s70_s19  ;;  %s99_s21 = int_to_ptr.hbm [resolvable:$true] %s98_s21 }
   0x9   :  { %76 = dma.hbm_to_vmem [thread:$0]  %s69_s15, 2048, %s71_s19, [#allocation9], %s638_s16, %s638_s16, %s639_s17  }
   0xa   :  { %s28_s23 = sshll.u32 %s777_s0, 4  ;;  %s641_s24 = smov [#allocation11]   ;;  %s29_s23 = int_to_ptr.hbm [resolvable:$true] %s28_s23 }
   0xb   :  { %s100_s25 = sshll.u32 %s641_s24, 4  ;;  %s642_s26 = smov [#allocation2]   ;;  %s101_s25 = int_to_ptr.vmem [resolvable:$true] %s100_s25 }
   0xc   :  { %106 = dma.hbm_to_vmem [thread:$0]  %s99_s21, 2048, %s101_s25, [#allocation12], %s638_s16, %s638_s16, %s639_s17  }
   0xd   :  { %s30_s9 = sshll.u32 %s642_s26, 4  ;;  %s53_s29 = sshll.u32 %s780_s3, 4  ;;  %s31_s9 = int_to_ptr.vmem [resolvable:$true] %s30_s9  ;;  %s54_s29 = int_to_ptr.hbm [resolvable:$true] %s53_s29 }
   0xe   :  { %33 = dma.hbm_to_vmem [thread:$0]  %s29_s23, 128, %s31_s9, [#allocation3]  }
   0xf   :  { %s83_s0 = sshll.u32 %s784_s7, 4  ;;  %s643_s15 = smov [#allocation7]   ;;  %s84_s0 = int_to_ptr.hbm [resolvable:$true] %s83_s0 }
  0x10   :  { %s55_s18 = sshll.u32 %s643_s15, 4  ;;  %s644_s19 = smov [#allocation10]   ;;  %s56_s18 = int_to_ptr.vmem [resolvable:$true] %s55_s18 }
  0x11   :  { %61 = dma.hbm_to_vmem [thread:$0]  %s54_s29, 2048, %s56_s18, [#allocation6], %s638_s16, %s638_s16, %s639_s17  }
  0x12   :  { %s85_s20 = sshll.u32 %s644_s19, 4  ;;  %s113_s3 = sshll.u32 %s788_s11, 4  ;;  %s86_s20 = int_to_ptr.vmem [resolvable:$true] %s85_s20  ;;  %s114_s3 = int_to_ptr.hbm [resolvable:$true] %s113_s3 }
  0x13   :  { %91 = dma.hbm_to_vmem [thread:$0]  %s84_s0, 2048, %s86_s20, [#allocation9], %s638_s16, %s638_s16, %s639_s17  }
  0x14   :  { %s645_s7 = smov [#allocation13]  }
  0x15   :  { %s115_s5 = sshll.u32 %s645_s7, 4  ;;  %s116_s5 = int_to_ptr.vmem [resolvable:$true] %s115_s5 }
  0x16   :  { %121 = dma.hbm_to_vmem [thread:$0]  %s114_s3, 2048, %s116_s5, [#allocation12], %s638_s16, %s638_s16, %s639_s17  }
  0x17   :  { %627 = dma.done.wait [#allocation3], 128  }
  0x18   :  { %628 = vsyncadd [#allocation3], 4294967168 }
  0x19   :  { %629 = dma.done.wait [#allocation6], 4096  }
  0x1a   :  { %630 = vsyncadd [#allocation6], 4294963200 }
  0x1b   :  { %631 = dma.done.wait [#allocation9], 4096  }
  0x1c   :  { %632 = vsyncadd [#allocation9], 4294963200 }
  0x1d   :  { %633 = dma.done.wait [#allocation12], 4096  }
  0x1e   :  { %634 = vsyncadd [#allocation12], 4294963200  ;;  %v168_v0 = vld [vmem:[#allocation5 + $0x78] sm:$0xff]  ;;  %v167_v1 = vld [vmem:[#allocation5 + $0x70] sm:$0xff]  ;;  %s646_s9 = smov [#allocation14]   ;;  %s406_s30 = sshll.u32 %s790_s13, 4  ;;  %s407_s30 = int_to_ptr.hbm [resolvable:$true] %s406_s30 }
  0x1f   :  { %173 = vmatpush.msra.mxu0 %v168_v0  ;;  %v166_v2 = vld [vmem:[#allocation5 + $0x68] sm:$0xff]  ;;  %v165_v3 = vld [vmem:[#allocation5 + $0x60] sm:$0xff]  ;;  %v209_v4 = vld [vmem:[#allocation7 + $0x78] sm:$0xff]  ;;  %s404_s27 = sshll.u32 %s646_s9, 4  ;;  %s405_s27 = int_to_ptr.vmem [resolvable:$true] %s404_s27 }
  0x20   :  { %v164_v5 = vld [vmem:[#allocation5 + $0x58] sm:$0xff]  ;;  %214 = vmatpush.msra.mxu1 %v209_v4  ;;  %v208_v6 = vld [vmem:[#allocation7 + $0x70] sm:$0xff]  ;;  %v207_v7 = vld [vmem:[#allocation7 + $0x68] sm:$0xff] }
  0x21   :  { %174 = vmatpush.msra.mxu0 %v167_v1  ;;  %v163_v8 = vld [vmem:[#allocation5 + $0x50] sm:$0xff]  ;;  %v162_v9 = vld [vmem:[#allocation5 + $0x48] sm:$0xff]  ;;  %v206_v10 = vld [vmem:[#allocation7 + $0x60] sm:$0xff] }
  0x22   :  { %215 = vmatpush.msra.mxu1 %v208_v6  ;;  %v205_v11 = vld [vmem:[#allocation7 + $0x58] sm:$0xff]  ;;  %v161_v12 = vld [vmem:[#allocation5 + $0x40] sm:$0xff]  ;;  %v204_v13 = vld [vmem:[#allocation7 + $0x50] sm:$0xff] }
  0x23   :  { %175 = vmatpush.msra.mxu0 %v166_v2  ;;  %v160_v14 = vld [vmem:[#allocation5 + $0x38] sm:$0xff]  ;;  %v203_v15 = vld [vmem:[#allocation7 + $0x48] sm:$0xff]  ;;  %v159_v16 = vld [vmem:[#allocation5 + $0x30] sm:$0xff] }
  0x24   :  { %216 = vmatpush.msra.mxu1 %v207_v7  ;;  %v202_v17 = vld [vmem:[#allocation7 + $0x40] sm:$0xff]  ;;  %v158_v18 = vld [vmem:[#allocation5 + $0x28] sm:$0xff]  ;;  %v201_v19 = vld [vmem:[#allocation7 + $0x38] sm:$0xff] }
  0x25   :  { %176 = vmatpush.msra.mxu0 %v165_v3  ;;  %v157_v20 = vld [vmem:[#allocation5 + $0x20] sm:$0xff]  ;;  %v200_v21 = vld [vmem:[#allocation7 + $0x30] sm:$0xff]  ;;  %v156_v22 = vld [vmem:[#allocation5 + $0x18] sm:$0xff] }
  0x26   :  { %217 = vmatpush.msra.mxu1 %v206_v10  ;;  %v199_v23 = vld [vmem:[#allocation7 + $0x28] sm:$0xff]  ;;  %v155_v24 = vld [vmem:[#allocation5 + $0x10] sm:$0xff]  ;;  %v198_v25 = vld [vmem:[#allocation7 + $0x20] sm:$0xff] }
  0x27   :  { %177 = vmatpush.msra.mxu0 %v164_v5  ;;  %v154_v26 = vld [vmem:[#allocation5 + $0x8] sm:$0xff]  ;;  %v197_v27 = vld [vmem:[#allocation7 + $0x18] sm:$0xff]  ;;  %v153_v28 = vld [vmem:[#allocation5] sm:$0xff] }
  0x28   :  { %218 = vmatpush.msra.mxu1 %v205_v11  ;;  %v152_v29 = vld [vmem:[#allocation2] sm:$0xff]  ;;  %v196_v30 = vld [vmem:[#allocation7 + $0x10] sm:$0xff]  ;;  %v195_v31 = vld [vmem:[#allocation7 + $0x8] sm:$0xff] }
  0x29   :  { %178 = vmatpush.msra.mxu0 %v163_v8  ;;  %v194_v32 = vld [vmem:[#allocation7] sm:$0xff]  ;;  %v250_v33 = vld [vmem:[#allocation8 + $0x78] sm:$0xff]  ;;  %v249_v34 = vld [vmem:[#allocation8 + $0x70] sm:$0xff] }
  0x2a   :  { %219 = vmatpush.msra.mxu1 %v204_v13  ;;  %255 = vmatpush.msra.mxu2 %v250_v33  ;;  %v248_v35 = vld [vmem:[#allocation8 + $0x68] sm:$0xff]  ;;  %v247_v36 = vld [vmem:[#allocation8 + $0x60] sm:$0xff]  ;;  %v246_v37 = vld [vmem:[#allocation8 + $0x58] sm:$0xff] }
  0x2b   :  { %179 = vmatpush.msra.mxu0 %v162_v9  ;;  %v245_v38 = vld [vmem:[#allocation8 + $0x50] sm:$0xff]  ;;  %v244_v39 = vld [vmem:[#allocation8 + $0x48] sm:$0xff]  ;;  %v243_v40 = vld [vmem:[#allocation8 + $0x40] sm:$0xff] }
  0x2c   :  { %220 = vmatpush.msra.mxu1 %v203_v15  ;;  %256 = vmatpush.msra.mxu2 %v249_v34  ;;  %v242_v41 = vld [vmem:[#allocation8 + $0x38] sm:$0xff]  ;;  %v241_v42 = vld [vmem:[#allocation8 + $0x30] sm:$0xff]  ;;  %v240_v43 = vld [vmem:[#allocation8 + $0x28] sm:$0xff] }
  0x2d   :  { %180 = vmatpush.msra.mxu0 %v161_v12  ;;  %v239_v44 = vld [vmem:[#allocation8 + $0x20] sm:$0xff]  ;;  %v238_v45 = vld [vmem:[#allocation8 + $0x18] sm:$0xff]  ;;  %v237_v50 = vld [vmem:[#allocation8 + $0x10] sm:$0xff] }
  0x2e   :  { %221 = vmatpush.msra.mxu1 %v202_v17  ;;  %257 = vmatpush.msra.mxu2 %v248_v35  ;;  %v429_v46 = vld [vmem:[%s779_s2] ss:$0 sm:$0xff]  ;;  %v236_v51 = vld [vmem:[#allocation8 + $0x8] sm:$0xff]  ;;  %v235_v52 = vld [vmem:[#allocation8] sm:$0xff] }
  0x2f   :  { %181 = vmatpush.msra.mxu0 %v160_v14  ;;  %v291_v53 = vld [vmem:[#allocation10 + $0x78] sm:$0xff]  ;;  %v290_v54 = vld [vmem:[#allocation10 + $0x70] sm:$0xff]  ;;  %v289_v55 = vld [vmem:[#allocation10 + $0x68] sm:$0xff] }
  0x30   :  { %222 = vmatpush.msra.mxu1 %v201_v19  ;;  %258 = vmatpush.msra.mxu2 %v247_v36  ;;  %v288_v56 = vld [vmem:[#allocation10 + $0x60] sm:$0xff]  ;;  %v287_v57 = vld [vmem:[#allocation10 + $0x58] sm:$0xff]  ;;  %v286_v58 = vld [vmem:[#allocation10 + $0x50] sm:$0xff] }
  0x31   :  { %182 = vmatpush.msra.mxu0 %v159_v16  ;;  %296 = vmatpush.msra.mxu3 %v291_v53  ;;  %v285_v59 = vld [vmem:[#allocation10 + $0x48] sm:$0xff]  ;;  %v284_v60 = vld [vmem:[#allocation10 + $0x40] sm:$0xff]  ;;  %v283_v61 = vld [vmem:[#allocation10 + $0x38] sm:$0xff] }
  0x32   :  { %223 = vmatpush.msra.mxu1 %v200_v21  ;;  %259 = vmatpush.msra.mxu2 %v246_v37  ;;  %v282_v62 = vld [vmem:[#allocation10 + $0x30] sm:$0xff]  ;;  %v281_v63 = vld [vmem:[#allocation10 + $0x28] sm:$0xff]  ;;  %v280_v0 = vld [vmem:[#allocation10 + $0x20] sm:$0xff] }
  0x33   :  { %183 = vmatpush.msra.mxu0 %v158_v18  ;;  %297 = vmatpush.msra.mxu3 %v290_v54  ;;  %v279_v1 = vld [vmem:[#allocation10 + $0x18] sm:$0xff]  ;;  %v278_v6 = vld [vmem:[#allocation10 + $0x10] sm:$0xff]  ;;  %v277_v7 = vld [vmem:[#allocation10 + $0x8] sm:$0xff] }
  0x34   :  { %224 = vmatpush.msra.mxu1 %v199_v23  ;;  %260 = vmatpush.msra.mxu2 %v245_v38  ;;  %v430_v2 = vld [vmem:[%s781_s4] ss:$0 sm:$0xff]  ;;  %v276_v8 = vld [vmem:[#allocation10] sm:$0xff]  ;;  %v331_v10 = vld [vmem:[#allocation11 + $0x70] sm:$0xff] }
  0x35   :  { %184 = vmatpush.msra.mxu0 %v157_v20  ;;  %298 = vmatpush.msra.mxu3 %v289_v55  ;;  %v332_v9 = vld [vmem:[#allocation11 + $0x78] sm:$0xff]  ;;  %v330_v11 = vld [vmem:[#allocation11 + $0x68] sm:$0xff]  ;;  %v329_v12 = vld [vmem:[#allocation11 + $0x60] sm:$0xff] }
  0x36   :  { %225 = vmatpush.msra.mxu1 %v198_v25  ;;  %261 = vmatpush.msra.mxu2 %v244_v39  ;;  %v328_v13 = vld [vmem:[#allocation11 + $0x58] sm:$0xff]  ;;  %v327_v14 = vld [vmem:[#allocation11 + $0x50] sm:$0xff]  ;;  %v326_v15 = vld [vmem:[#allocation11 + $0x48] sm:$0xff] }
  0x37   :  { %185 = vmatpush.msra.mxu0 %v156_v22  ;;  %299 = vmatpush.msra.mxu3 %v288_v56  ;;  %v325_v16 = vld [vmem:[#allocation11 + $0x40] sm:$0xff]  ;;  %v324_v17 = vld [vmem:[#allocation11 + $0x38] sm:$0xff]  ;;  %v323_v18 = vld [vmem:[#allocation11 + $0x30] sm:$0xff] }
  0x38   :  { %226 = vmatpush.msra.mxu1 %v197_v27  ;;  %262 = vmatpush.msra.mxu2 %v243_v40  ;;  %v322_v19 = vld [vmem:[#allocation11 + $0x28] sm:$0xff]  ;;  %v321_v20 = vld [vmem:[#allocation11 + $0x20] sm:$0xff]  ;;  %v320_v21 = vld [vmem:[#allocation11 + $0x18] sm:$0xff] }
  0x39   :  { %186 = vmatpush.msra.mxu0 %v155_v24  ;;  %300 = vmatpush.msra.mxu3 %v287_v57  ;;  %v431_v22 = vld [vmem:[%s783_s6] ss:$0 sm:$0xff]  ;;  %v318_v27 = vld [vmem:[#allocation11 + $0x8] sm:$0xff]  ;;  %v368_v34 = vld [vmem:[#allocation13 + $0x50] sm:$0xff] }
  0x3a   :  { %227 = vmatpush.msra.mxu1 %v196_v30  ;;  %263 = vmatpush.msra.mxu2 %v242_v41  ;;  %v372_v30 = vld [vmem:[#allocation13 + $0x70] sm:$0xff]  ;;  %v369_v33 = vld [vmem:[#allocation13 + $0x58] sm:$0xff]  ;;  %v367_v35 = vld [vmem:[#allocation13 + $0x48] sm:$0xff] }
  0x3b   :  { %187 = vmatpush.msra.mxu0 %v154_v26  ;;  %301 = vmatpush.msra.mxu3 %v286_v58  ;;  %v319_v26 = vld [vmem:[#allocation11 + $0x10] sm:$0xff]  ;;  %v366_v36 = vld [vmem:[#allocation13 + $0x40] sm:$0xff]  ;;  %v365_v37 = vld [vmem:[#allocation13 + $0x38] sm:$0xff] }
  0x3c   :  { %228 = vmatpush.msra.mxu1 %v195_v31  ;;  %264 = vmatpush.msra.mxu2 %v241_v42  ;;  %v371_v31 = vld [vmem:[#allocation13 + $0x68] sm:$0xff]  ;;  %v364_v38 = vld [vmem:[#allocation13 + $0x30] sm:$0xff]  ;;  %v362_v40 = vld [vmem:[#allocation13 + $0x20] sm:$0xff] }
  0x3d   :  { %188 = vmatpush.msra.mxu0 %v153_v28  ;;  %302 = vmatpush.msra.mxu3 %v285_v59  ;;  %v317_v28 = vld [vmem:[#allocation11] sm:$0xff]  ;;  %v363_v39 = vld [vmem:[#allocation13 + $0x28] sm:$0xff]  ;;  %v361_v41 = vld [vmem:[#allocation13 + $0x18] sm:$0xff] }
  0x3e   :  { %189 = vmatmul.f32.vlgmr.msra.gmra.mxu0 %v152_v29  ;;  %229 = vmatpush.msra.mxu1 %v194_v32  ;;  %v373_v29 = vld [vmem:[#allocation13 + $0x78] sm:$0xff]  ;;  %v370_v32 = vld [vmem:[#allocation13 + $0x60] sm:$0xff] }
  0x3f   :  { %265 = vmatpush.msra.mxu2 %v240_v43  ;;  %303 = vmatpush.msra.mxu3 %v284_v60  ;;  %v432_v42 = vld [vmem:[%s785_s8] ss:$0 sm:$0xff] }
  0x40   :  { %337 = vmatpush.msrb.mxu0 %v332_v9  ;;  %378 = vmatpush.msrb.mxu1 %v373_v29  ;;  %v434_v53 = vld [vmem:[%s789_s12] ss:$0 sm:$0xff] }
  0x41   :  { %266 = vmatpush.msra.mxu2 %v239_v44  ;;  %304 = vmatpush.msra.mxu3 %v283_v61 }
  0x42   :  { %338 = vmatpush.msrb.mxu0 %v331_v10  ;;  %379 = vmatpush.msrb.mxu1 %v372_v30 }
  0x43   :  { %267 = vmatpush.msra.mxu2 %v238_v45  ;;  %305 = vmatpush.msra.mxu3 %v282_v62 }
  0x44   :  { %339 = vmatpush.msrb.mxu0 %v330_v11  ;;  %380 = vmatpush.msrb.mxu1 %v371_v31 }
  0x45   :  { %268 = vmatpush.msra.mxu2 %v237_v50  ;;  %306 = vmatpush.msra.mxu3 %v281_v63 }
  0x46   :  { %340 = vmatpush.msrb.mxu0 %v329_v12  ;;  %381 = vmatpush.msrb.mxu1 %v370_v32 }
  0x47   :  { %269 = vmatpush.msra.mxu2 %v236_v51  ;;  %307 = vmatpush.msra.mxu3 %v280_v0 }
  0x48   :  { %341 = vmatpush.msrb.mxu0 %v328_v13  ;;  %382 = vmatpush.msrb.mxu1 %v369_v33 }
  0x49   :  { %270 = vmatpush.msra.mxu2 %v235_v52  ;;  %308 = vmatpush.msra.mxu3 %v279_v1 }
  0x4a   :  { %342 = vmatpush.msrb.mxu0 %v327_v14  ;;  %383 = vmatpush.msrb.mxu1 %v368_v34 }
  0x4b   :  { %309 = vmatpush.msra.mxu3 %v278_v6 }
  0x4c   :  { %343 = vmatpush.msrb.mxu0 %v326_v15  ;;  %384 = vmatpush.msrb.mxu1 %v367_v35 }
  0x4d   :  { %310 = vmatpush.msra.mxu3 %v277_v7 }
  0x4e   :  { %344 = vmatpush.msrb.mxu0 %v325_v16  ;;  %385 = vmatpush.msrb.mxu1 %v366_v36 }
  0x4f   :  { %311 = vmatpush.msra.mxu3 %v276_v8 }
  0x50   :  { %345 = vmatpush.msrb.mxu0 %v324_v17  ;;  %386 = vmatpush.msrb.mxu1 %v365_v37 }
  0x52   :  { %346 = vmatpush.msrb.mxu0 %v323_v18  ;;  %387 = vmatpush.msrb.mxu1 %v364_v38 }
  0x54   :  { %347 = vmatpush.msrb.mxu0 %v322_v19  ;;  %388 = vmatpush.msrb.mxu1 %v363_v39 }
  0x56   :  { %348 = vmatpush.msrb.mxu0 %v321_v20  ;;  %389 = vmatpush.msrb.mxu1 %v362_v40 }
  0x58   :  { %349 = vmatpush.msrb.mxu0 %v320_v21  ;;  %390 = vmatpush.msrb.mxu1 %v361_v41 }
  0x5a   :  { %350 = vmatpush.msrb.mxu0 %v319_v26 }
  0x5c   :  { %351 = vmatpush.msrb.mxu0 %v318_v27 }
  0x5e   :  { %352 = vmatpush.msrb.mxu0 %v317_v28 }
  0xbb   :  { %v190_v47 = vpop.f32.mrf.mxu0 }
  0xbc   :  { %v191_v48 = vadd.f32 %v429_v46, %v190_v47  ;;  %v360_v46 = vld [vmem:[#allocation13 + $0x10] sm:$0xff]  ;;  %v359_v47 = vld [vmem:[#allocation13 + $0x8] sm:$0xff] }
  0xbd   :  { %391 = vmatpush.msrb.mxu1 %v360_v46 }
  0xbe   :  { %v193_v49 = vmax.f32 %v191_v48, 0.0  ;;  %v358_v48 = vld [vmem:[#allocation13] sm:$0xff] }
  0xbf   :  { %392 = vmatpush.msrb.mxu1 %v359_v47 }
  0xc0   :  { %230 = vmatmul.f32.vlgmr.msra.gmra.mxu1 %v193_v49  ;;  %v433_v49 = vld [vmem:[%s787_s10] ss:$0 sm:$0xff] }
  0xc1   :  { %393 = vmatpush.msrb.mxu1 %v358_v48 }
 0x13d   :  { %v231_v3 = vpop.f32.mrf.mxu1 }
 0x13e   :  { %v232_v4 = vadd.f32 %v430_v2, %v231_v3 }
 0x140   :  { %v234_v5 = vmax.f32 %v232_v4, 0.0 }
 0x142   :  { %271 = vmatmul.f32.vlgmr.msra.gmra.mxu2 %v234_v5 }
 0x1c5   :  { %v272_v23 = vpop.f32.mrf.mxu2 }
 0x1c6   :  { %v273_v24 = vadd.f32 %v431_v22, %v272_v23 }
 0x1c8   :  { %v275_v25 = vmax.f32 %v273_v24, 0.0 }
 0x1ca   :  { %312 = vmatmul.f32.vlgmr.msra.gmra.mxu3 %v275_v25 }
 0x24d   :  { %v313_v43 = vpop.f32.mrf.mxu3 }
 0x24e   :  { %v314_v44 = vadd.f32 %v432_v42, %v313_v43 }
 0x250   :  { %v316_v45 = vmax.f32 %v314_v44, 0.0 }
 0x252   :  { %353 = vmatmul.f32.vlgmr.msrb.gmra.mxu0 %v316_v45 }
 0x2cf   :  { %v354_v50 = vpop.f32.mrf.mxu0 }
 0x2d0   :  { %v355_v51 = vadd.f32 %v433_v49, %v354_v50 }
 0x2d2   :  { %v357_v52 = vmax.f32 %v355_v51, 0.0 }
 0x2d4   :  { %394 = vmatmul.f32.vlgmr.msrb.gmra.mxu1 %v357_v52 }
 0x351   :  { %v395_v54 = vpop.f32.mrf.mxu1 }
 0x352   :  { %v396_v55 = vadd.f32 %v434_v53, %v395_v54 }
 0x354   :  { %398 = vst [vmem:[#allocation14] sm:$0xff] %v396_v55 }
 0x355   :  { %409 = dma.vmem_to_hbm [thread:$0]  %s405_s27, 128, %s407_s30, [#allocation4]  }
 0x356   :  { %635 = dma.done.wait [#allocation4], 128  }
 0x357   :  { %636 = vsyncadd [#allocation4], 4294967168 }
 0x358   :  { %414 = vsyncpa [#allocation3], 1 }
 0x359   :  { %415 = vsyncpa [#allocation6], 1 }
 0x35a   :  { %416 = vsyncpa [#allocation9], 1 }
 0x35b   :  { %417 = vsyncpa [#allocation12], 1 }
 0x35c   :  { %418 = vsyncpa [#allocation4], 1 }

// kernel: tpu_custom_call.1
= control target key start
LH: loop header
LB: loop body
LE: loop exit
PB: predicated region body
PF: predicated region fallthrough
CT: control target
= control target key end

     0   :  { %18 = vsyncpa [#allocation3], 0  ;;  %s777_s0 = inlined_call_operand.hbm [shape: f32[8,128], index: 0, kind: input, shape index: {}]   ;;  %s778_s1 = inlined_call_operand.hbm [shape: f32[128,128], index: 1, kind: input, shape index: {}]   ;;  %s779_s2 = inlined_call_operand.vmem [shape: f32[1,128], index: 2, kind: input, shape index: {}]   ;;  %s780_s3 = inlined_call_operand.hbm [shape: f32[128,128], index: 3, kind: input, shape index: {}]   ;;  %s781_s4 = inlined_call_operand.vmem [shape: f32[1,128], index: 4, kind: input, shape index: {}]   ;;  %s782_s5 = inlined_call_operand.hbm [shape: f32[128,128], index: 5, kind: input, shape index: {}]   ;;  %s783_s6 = inlined_call_operand.vmem [shape: f32[1,128], index: 6, kind: input, shape index: {}]   ;;  %s784_s7 = inlined_call_operand.hbm [shape: f32[128,128], index: 7, kind: input, shape index: {}]   ;;  %s785_s8 = inlined_call_operand.vmem [shape: f32[1,128], index: 8, kind: input, shape index: {}]   ;;  %s786_s9 = inlined_call_operand.hbm [shape: f32[128,128], index: 9, kind: input, shape index: {}]   ;;  %s787_s10 = inlined_call_operand.vmem [shape: f32[1,128], index: 10, kind: input, shape index: {}]   ;;  %s788_s11 = inlined_call_operand.hbm [shape: f32[128,128], index: 11, kind: input, shape index: {}]   ;;  %s789_s12 = inlined_call_operand.vmem [shape: f32[1,128], index: 12, kind: input, shape index: {}]   ;;  %s790_s13 = inlined_call_operand.hbm [shape: f32[8,128], index: 13, kind: output, shape index: {}]  }
   0x1   :  { %19 = vsyncpa [#allocation6], 0 }
   0x2   :  { %20 = vsyncpa [#allocation9], 0 }
   0x3   :  { %21 = vsyncpa [#allocation12], 0  ;;  %s38_s27 = sshll.u32 %s778_s1, 4  ;;  %s39_s27 = int_to_ptr.hbm [resolvable:$true] %s38_s27 }
   0x4   :  { %22 = vsyncpa [#allocation4], 0  ;;  %s637_s28 = smov [#allocation5]   ;;  %s68_s15 = sshll.u32 %s782_s5, 4  ;;  %s69_s15 = int_to_ptr.hbm [resolvable:$true] %s68_s15 }
   0x5   :  { %s40_s29 = sshll.u32 %s637_s28, 4  ;;  %s638_s16 = smov 128   ;;  %s41_s29 = int_to_ptr.vmem [resolvable:$true] %s40_s29 }
   0x6   :  { %s639_s17 = smov 8   ;;  %s640_s18 = smov [#allocation8]  }
   0x7   :  { %46 = dma.hbm_to_vmem [thread:$0]  %s39_s27, 2048, %s41_s29, [#allocation6], %s638_s16, %s638_s16, %s639_s17  }
   0x8   :  { %s70_s19 = sshll.u32 %s640_s18, 4  ;;  %s98_s21 = sshll.u32 %s786_s9, 4  ;;  %s71_s19 = int_to_ptr.vmem [resolvable:$true] %s70_s19  ;;  %s99_s21 = int_to_ptr.hbm [resolvable:$true] %s98_s21 }
   0x9   :  { %76 = dma.hbm_to_vmem [thread:$0]  %s69_s15, 2048, %s71_s19, [#allocation9], %s638_s16, %s638_s16, %s639_s17  }
   0xa   :  { %s28_s23 = sshll.u32 %s777_s0, 4  ;;  %s641_s24 = smov [#allocation11]   ;;  %s29_s23 = int_to_ptr.hbm [resolvable:$true] %s28_s23 }
   0xb   :  { %s100_s25 = sshll.u32 %s641_s24, 4  ;;  %s642_s26 = smov [#allocation2]   ;;  %s101_s25 = int_to_ptr.vmem [resolvable:$true] %s100_s25 }
   0xc   :  { %106 = dma.hbm_to_vmem [thread:$0]  %s99_s21, 2048, %s101_s25, [#allocation12], %s638_s16, %s638_s16, %s639_s17  }
   0xd   :  { %s30_s9 = sshll.u32 %s642_s26, 4  ;;  %s53_s29 = sshll.u32 %s780_s3, 4  ;;  %s31_s9 = int_to_ptr.vmem [resolvable:$true] %s30_s9  ;;  %s54_s29 = int_to_ptr.hbm [resolvable:$true] %s53_s29 }
   0xe   :  { %33 = dma.hbm_to_vmem [thread:$0]  %s29_s23, 128, %s31_s9, [#allocation3]  }
   0xf   :  { %s83_s0 = sshll.u32 %s784_s7, 4  ;;  %s643_s15 = smov [#allocation7]   ;;  %s84_s0 = int_to_ptr.hbm [resolvable:$true] %s83_s0 }
  0x10   :  { %s55_s18 = sshll.u32 %s643_s15, 4  ;;  %s644_s19 = smov [#allocation10]   ;;  %s56_s18 = int_to_ptr.vmem [resolvable:$true] %s55_s18 }
  0x11   :  { %61 = dma.hbm_to_vmem [thread:$0]  %s54_s29, 2048, %s56_s18, [#allocation6], %s638_s16, %s638_s16, %s639_s17  }
  0x12   :  { %s85_s20 = sshll.u32 %s644_s19, 4  ;;  %s113_s3 = sshll.u32 %s788_s11, 4  ;;  %s86_s20 = int_to_ptr.vmem [resolvable:$true] %s85_s20  ;;  %s114_s3 = int_to_ptr.hbm [resolvable:$true] %s113_s3 }
  0x13   :  { %91 = dma.hbm_to_vmem [thread:$0]  %s84_s0, 2048, %s86_s20, [#allocation9], %s638_s16, %s638_s16, %s639_s17  }
  0x14   :  { %s645_s7 = smov [#allocation13]  }
  0x15   :  { %s115_s5 = sshll.u32 %s645_s7, 4  ;;  %s116_s5 = int_to_ptr.vmem [resolvable:$true] %s115_s5 }
  0x16   :  { %121 = dma.hbm_to_vmem [thread:$0]  %s114_s3, 2048, %s116_s5, [#allocation12], %s638_s16, %s638_s16, %s639_s17  }
  0x17   :  { %627 = dma.done.wait [#allocation3], 128  }
  0x18   :  { %628 = vsyncadd [#allocation3], 4294967168 }
  0x19   :  { %629 = dma.done.wait [#allocation6], 4096  }
  0x1a   :  { %630 = vsyncadd [#allocation6], 4294963200 }
  0x1b   :  { %631 = dma.done.wait [#allocation9], 4096  }
  0x1c   :  { %632 = vsyncadd [#allocation9], 4294963200 }
  0x1d   :  { %633 = dma.done.wait [#allocation12], 4096  }
  0x1e   :  { %634 = vsyncadd [#allocation12], 4294963200  ;;  %v168_v0 = vld [vmem:[#allocation5 + $0x78] sm:$0xff]  ;;  %v167_v1 = vld [vmem:[#allocation5 + $0x70] sm:$0xff]  ;;  %s646_s9 = smov [#allocation14]   ;;  %s406_s30 = sshll.u32 %s790_s13, 4  ;;  %s407_s30 = int_to_ptr.hbm [resolvable:$true] %s406_s30 }
  0x1f   :  { %173 = vmatpush.msra.mxu0 %v168_v0  ;;  %v166_v2 = vld [vmem:[#allocation5 + $0x68] sm:$0xff]  ;;  %v165_v3 = vld [vmem:[#allocation5 + $0x60] sm:$0xff]  ;;  %v209_v4 = vld [vmem:[#allocation7 + $0x78] sm:$0xff]  ;;  %s404_s27 = sshll.u32 %s646_s9, 4  ;;  %s405_s27 = int_to_ptr.vmem [resolvable:$true] %s404_s27 }
  0x20   :  { %v164_v5 = vld [vmem:[#allocation5 + $0x58] sm:$0xff]  ;;  %214 = vmatpush.msra.mxu1 %v209_v4  ;;  %v208_v6 = vld [vmem:[#allocation7 + $0x70] sm:$0xff]  ;;  %v207_v7 = vld [vmem:[#allocation7 + $0x68] sm:$0xff] }
  0x21   :  { %174 = vmatpush.msra.mxu0 %v167_v1  ;;  %v163_v8 = vld [vmem:[#allocation5 + $0x50] sm:$0xff]  ;;  %v162_v9 = vld [vmem:[#allocation5 + $0x48] sm:$0xff]  ;;  %v206_v10 = vld [vmem:[#allocation7 + $0x60] sm:$0xff] }
  0x22   :  { %215 = vmatpush.msra.mxu1 %v208_v6  ;;  %v205_v11 = vld [vmem:[#allocation7 + $0x58] sm:$0xff]  ;;  %v161_v12 = vld [vmem:[#allocation5 + $0x40] sm:$0xff]  ;;  %v204_v13 = vld [vmem:[#allocation7 + $0x50] sm:$0xff] }
  0x23   :  { %175 = vmatpush.msra.mxu0 %v166_v2  ;;  %v160_v14 = vld [vmem:[#allocation5 + $0x38] sm:$0xff]  ;;  %v203_v15 = vld [vmem:[#allocation7 + $0x48] sm:$0xff]  ;;  %v159_v16 = vld [vmem:[#allocation5 + $0x30] sm:$0xff] }
  0x24   :  { %216 = vmatpush.msra.mxu1 %v207_v7  ;;  %v202_v17 = vld [vmem:[#allocation7 + $0x40] sm:$0xff]  ;;  %v158_v18 = vld [vmem:[#allocation5 + $0x28] sm:$0xff]  ;;  %v201_v19 = vld [vmem:[#allocation7 + $0x38] sm:$0xff] }
  0x25   :  { %176 = vmatpush.msra.mxu0 %v165_v3  ;;  %v157_v20 = vld [vmem:[#allocation5 + $0x20] sm:$0xff]  ;;  %v200_v21 = vld [vmem:[#allocation7 + $0x30] sm:$0xff]  ;;  %v156_v22 = vld [vmem:[#allocation5 + $0x18] sm:$0xff] }
  0x26   :  { %217 = vmatpush.msra.mxu1 %v206_v10  ;;  %v199_v23 = vld [vmem:[#allocation7 + $0x28] sm:$0xff]  ;;  %v155_v24 = vld [vmem:[#allocation5 + $0x10] sm:$0xff]  ;;  %v198_v25 = vld [vmem:[#allocation7 + $0x20] sm:$0xff] }
  0x27   :  { %177 = vmatpush.msra.mxu0 %v164_v5  ;;  %v154_v26 = vld [vmem:[#allocation5 + $0x8] sm:$0xff]  ;;  %v197_v27 = vld [vmem:[#allocation7 + $0x18] sm:$0xff]  ;;  %v153_v28 = vld [vmem:[#allocation5] sm:$0xff] }
  0x28   :  { %218 = vmatpush.msra.mxu1 %v205_v11  ;;  %v152_v29 = vld [vmem:[#allocation2] sm:$0xff]  ;;  %v196_v30 = vld [vmem:[#allocation7 + $0x10] sm:$0xff]  ;;  %v195_v31 = vld [vmem:[#allocation7 + $0x8] sm:$0xff] }
  0x29   :  { %178 = vmatpush.msra.mxu0 %v163_v8  ;;  %v194_v32 = vld [vmem:[#allocation7] sm:$0xff]  ;;  %v250_v33 = vld [vmem:[#allocation8 + $0x78] sm:$0xff]  ;;  %v249_v34 = vld [vmem:[#allocation8 + $0x70] sm:$0xff] }
  0x2a   :  { %219 = vmatpush.msra.mxu1 %v204_v13  ;;  %255 = vmatpush.msra.mxu2 %v250_v33  ;;  %v248_v35 = vld [vmem:[#allocation8 + $0x68] sm:$0xff]  ;;  %v247_v36 = vld [vmem:[#allocation8 + $0x60] sm:$0xff]  ;;  %v246_v37 = vld [vmem:[#allocation8 + $0x58] sm:$0xff] }
  0x2b   :  { %179 = vmatpush.msra.mxu0 %v162_v9  ;;  %v245_v38 = vld [vmem:[#allocation8 + $0x50] sm:$0xff]  ;;  %v244_v39 = vld [vmem:[#allocation8 + $0x48] sm:$0xff]  ;;  %v243_v40 = vld [vmem:[#allocation8 + $0x40] sm:$0xff] }
  0x2c   :  { %220 = vmatpush.msra.mxu1 %v203_v15  ;;  %256 = vmatpush.msra.mxu2 %v249_v34  ;;  %v242_v41 = vld [vmem:[#allocation8 + $0x38] sm:$0xff]  ;;  %v241_v42 = vld [vmem:[#allocation8 + $0x30] sm:$0xff]  ;;  %v240_v43 = vld [vmem:[#allocation8 + $0x28] sm:$0xff] }
  0x2d   :  { %180 = vmatpush.msra.mxu0 %v161_v12  ;;  %v239_v44 = vld [vmem:[#allocation8 + $0x20] sm:$0xff]  ;;  %v238_v45 = vld [vmem:[#allocation8 + $0x18] sm:$0xff]  ;;  %v237_v50 = vld [vmem:[#allocation8 + $0x10] sm:$0xff] }
  0x2e   :  { %221 = vmatpush.msra.mxu1 %v202_v17  ;;  %257 = vmatpush.msra.mxu2 %v248_v35  ;;  %v429_v46 = vld [vmem:[%s779_s2] ss:$0 sm:$0xff]  ;;  %v236_v51 = vld [vmem:[#allocation8 + $0x8] sm:$0xff]  ;;  %v235_v52 = vld [vmem:[#allocation8] sm:$0xff] }
  0x2f   :  { %181 = vmatpush.msra.mxu0 %v160_v14  ;;  %v291_v53 = vld [vmem:[#allocation10 + $0x78] sm:$0xff]  ;;  %v290_v54 = vld [vmem:[#allocation10 + $0x70] sm:$0xff]  ;;  %v289_v55 = vld [vmem:[#allocation10 + $0x68] sm:$0xff] }
  0x30   :  { %222 = vmatpush.msra.mxu1 %v201_v19  ;;  %258 = vmatpush.msra.mxu2 %v247_v36  ;;  %v288_v56 = vld [vmem:[#allocation10 + $0x60] sm:$0xff]  ;;  %v287_v57 = vld [vmem:[#allocation10 + $0x58] sm:$0xff]  ;;  %v286_v58 = vld [vmem:[#allocation10 + $0x50] sm:$0xff] }
  0x31   :  { %182 = vmatpush.msra.mxu0 %v159_v16  ;;  %296 = vmatpush.msra.mxu3 %v291_v53  ;;  %v285_v59 = vld [vmem:[#allocation10 + $0x48] sm:$0xff]  ;;  %v284_v60 = vld [vmem:[#allocation10 + $0x40] sm:$0xff]  ;;  %v283_v61 = vld [vmem:[#allocation10 + $0x38] sm:$0xff] }
  0x32   :  { %223 = vmatpush.msra.mxu1 %v200_v21  ;;  %259 = vmatpush.msra.mxu2 %v246_v37  ;;  %v282_v62 = vld [vmem:[#allocation10 + $0x30] sm:$0xff]  ;;  %v281_v63 = vld [vmem:[#allocation10 + $0x28] sm:$0xff]  ;;  %v280_v0 = vld [vmem:[#allocation10 + $0x20] sm:$0xff] }
  0x33   :  { %183 = vmatpush.msra.mxu0 %v158_v18  ;;  %297 = vmatpush.msra.mxu3 %v290_v54  ;;  %v279_v1 = vld [vmem:[#allocation10 + $0x18] sm:$0xff]  ;;  %v278_v6 = vld [vmem:[#allocation10 + $0x10] sm:$0xff]  ;;  %v277_v7 = vld [vmem:[#allocation10 + $0x8] sm:$0xff] }
  0x34   :  { %224 = vmatpush.msra.mxu1 %v199_v23  ;;  %260 = vmatpush.msra.mxu2 %v245_v38  ;;  %v430_v2 = vld [vmem:[%s781_s4] ss:$0 sm:$0xff]  ;;  %v276_v8 = vld [vmem:[#allocation10] sm:$0xff]  ;;  %v331_v10 = vld [vmem:[#allocation11 + $0x70] sm:$0xff] }
  0x35   :  { %184 = vmatpush.msra.mxu0 %v157_v20  ;;  %298 = vmatpush.msra.mxu3 %v289_v55  ;;  %v332_v9 = vld [vmem:[#allocation11 + $0x78] sm:$0xff]  ;;  %v330_v11 = vld [vmem:[#allocation11 + $0x68] sm:$0xff]  ;;  %v329_v12 = vld [vmem:[#allocation11 + $0x60] sm:$0xff] }
  0x36   :  { %225 = vmatpush.msra.mxu1 %v198_v25  ;;  %261 = vmatpush.msra.mxu2 %v244_v39  ;;  %v328_v13 = vld [vmem:[#allocation11 + $0x58] sm:$0xff]  ;;  %v327_v14 = vld [vmem:[#allocation11 + $0x50] sm:$0xff]  ;;  %v326_v15 = vld [vmem:[#allocation11 + $0x48] sm:$0xff] }
  0x37   :  { %185 = vmatpush.msra.mxu0 %v156_v22  ;;  %299 = vmatpush.msra.mxu3 %v288_v56  ;;  %v325_v16 = vld [vmem:[#allocation11 + $0x40] sm:$0xff]  ;;  %v324_v17 = vld [vmem:[#allocation11 + $0x38] sm:$0xff]  ;;  %v323_v18 = vld [vmem:[#allocation11 + $0x30] sm:$0xff] }
  0x38   :  { %226 = vmatpush.msra.mxu1 %v197_v27  ;;  %262 = vmatpush.msra.mxu2 %v243_v40  ;;  %v322_v19 = vld [vmem:[#allocation11 + $0x28] sm:$0xff]  ;;  %v321_v20 = vld [vmem:[#allocation11 + $0x20] sm:$0xff]  ;;  %v320_v21 = vld [vmem:[#allocation11 + $0x18] sm:$0xff] }
  0x39   :  { %186 = vmatpush.msra.mxu0 %v155_v24  ;;  %300 = vmatpush.msra.mxu3 %v287_v57  ;;  %v431_v22 = vld [vmem:[%s783_s6] ss:$0 sm:$0xff]  ;;  %v318_v27 = vld [vmem:[#allocation11 + $0x8] sm:$0xff]  ;;  %v368_v34 = vld [vmem:[#allocation13 + $0x50] sm:$0xff] }
  0x3a   :  { %227 = vmatpush.msra.mxu1 %v196_v30  ;;  %263 = vmatpush.msra.mxu2 %v242_v41  ;;  %v372_v30 = vld [vmem:[#allocation13 + $0x70] sm:$0xff]  ;;  %v369_v33 = vld [vmem:[#allocation13 + $0x58] sm:$0xff]  ;;  %v367_v35 = vld [vmem:[#allocation13 + $0x48] sm:$0xff] }
  0x3b   :  { %187 = vmatpush.msra.mxu0 %v154_v26  ;;  %301 = vmatpush.msra.mxu3 %v286_v58  ;;  %v319_v26 = vld [vmem:[#allocation11 + $0x10] sm:$0xff]  ;;  %v366_v36 = vld [vmem:[#allocation13 + $0x40] sm:$0xff]  ;;  %v365_v37 = vld [vmem:[#allocation13 + $0x38] sm:$0xff] }
  0x3c   :  { %228 = vmatpush.msra.mxu1 %v195_v31  ;;  %264 = vmatpush.msra.mxu2 %v241_v42  ;;  %v371_v31 = vld [vmem:[#allocation13 + $0x68] sm:$0xff]  ;;  %v364_v38 = vld [vmem:[#allocation13 + $0x30] sm:$0xff]  ;;  %v362_v40 = vld [vmem:[#allocation13 + $0x20] sm:$0xff] }
  0x3d   :  { %188 = vmatpush.msra.mxu0 %v153_v28  ;;  %302 = vmatpush.msra.mxu3 %v285_v59  ;;  %v317_v28 = vld [vmem:[#allocation11] sm:$0xff]  ;;  %v363_v39 = vld [vmem:[#allocation13 + $0x28] sm:$0xff]  ;;  %v361_v41 = vld [vmem:[#allocation13 + $0x18] sm:$0xff] }
  0x3e   :  { %189 = vmatmul.f32.vlgmr.msra.gmra.mxu0 %v152_v29  ;;  %229 = vmatpush.msra.mxu1 %v194_v32  ;;  %v373_v29 = vld [vmem:[#allocation13 + $0x78] sm:$0xff]  ;;  %v370_v32 = vld [vmem:[#allocation13 + $0x60] sm:$0xff] }
  0x3f   :  { %265 = vmatpush.msra.mxu2 %v240_v43  ;;  %303 = vmatpush.msra.mxu3 %v284_v60  ;;  %v432_v42 = vld [vmem:[%s785_s8] ss:$0 sm:$0xff] }
  0x40   :  { %337 = vmatpush.msrb.mxu0 %v332_v9  ;;  %378 = vmatpush.msrb.mxu1 %v373_v29  ;;  %v434_v53 = vld [vmem:[%s789_s12] ss:$0 sm:$0xff] }
  0x41   :  { %266 = vmatpush.msra.mxu2 %v239_v44  ;;  %304 = vmatpush.msra.mxu3 %v283_v61 }
  0x42   :  { %338 = vmatpush.msrb.mxu0 %v331_v10  ;;  %379 = vmatpush.msrb.mxu1 %v372_v30 }
  0x43   :  { %267 = vmatpush.msra.mxu2 %v238_v45  ;;  %305 = vmatpush.msra.mxu3 %v282_v62 }
  0x44   :  { %339 = vmatpush.msrb.mxu0 %v330_v11  ;;  %380 = vmatpush.msrb.mxu1 %v371_v31 }
  0x45   :  { %268 = vmatpush.msra.mxu2 %v237_v50  ;;  %306 = vmatpush.msra.mxu3 %v281_v63 }
  0x46   :  { %340 = vmatpush.msrb.mxu0 %v329_v12  ;;  %381 = vmatpush.msrb.mxu1 %v370_v32 }
  0x47   :  { %269 = vmatpush.msra.mxu2 %v236_v51  ;;  %307 = vmatpush.msra.mxu3 %v280_v0 }
  0x48   :  { %341 = vmatpush.msrb.mxu0 %v328_v13  ;;  %382 = vmatpush.msrb.mxu1 %v369_v33 }
  0x49   :  { %270 = vmatpush.msra.mxu2 %v235_v52  ;;  %308 = vmatpush.msra.mxu3 %v279_v1 }
  0x4a   :  { %342 = vmatpush.msrb.mxu0 %v327_v14  ;;  %383 = vmatpush.msrb.mxu1 %v368_v34 }
  0x4b   :  { %309 = vmatpush.msra.mxu3 %v278_v6 }
  0x4c   :  { %343 = vmatpush.msrb.mxu0 %v326_v15  ;;  %384 = vmatpush.msrb.mxu1 %v367_v35 }
  0x4d   :  { %310 = vmatpush.msra.mxu3 %v277_v7 }
  0x4e   :  { %344 = vmatpush.msrb.mxu0 %v325_v16  ;;  %385 = vmatpush.msrb.mxu1 %v366_v36 }
  0x4f   :  { %311 = vmatpush.msra.mxu3 %v276_v8 }
  0x50   :  { %345 = vmatpush.msrb.mxu0 %v324_v17  ;;  %386 = vmatpush.msrb.mxu1 %v365_v37 }
  0x52   :  { %346 = vmatpush.msrb.mxu0 %v323_v18  ;;  %387 = vmatpush.msrb.mxu1 %v364_v38 }
  0x54   :  { %347 = vmatpush.msrb.mxu0 %v322_v19  ;;  %388 = vmatpush.msrb.mxu1 %v363_v39 }
  0x56   :  { %348 = vmatpush.msrb.mxu0 %v321_v20  ;;  %389 = vmatpush.msrb.mxu1 %v362_v40 }
  0x58   :  { %349 = vmatpush.msrb.mxu0 %v320_v21  ;;  %390 = vmatpush.msrb.mxu1 %v361_v41 }
  0x5a   :  { %350 = vmatpush.msrb.mxu0 %v319_v26 }
  0x5c   :  { %351 = vmatpush.msrb.mxu0 %v318_v27 }
  0x5e   :  { %352 = vmatpush.msrb.mxu0 %v317_v28 }
  0xbb   :  { %v190_v47 = vpop.f32.mrf.mxu0 }
  0xbc   :  { %v191_v48 = vadd.f32 %v429_v46, %v190_v47  ;;  %v360_v46 = vld [vmem:[#allocation13 + $0x10] sm:$0xff]  ;;  %v359_v47 = vld [vmem:[#allocation13 + $0x8] sm:$0xff] }
  0xbd   :  { %391 = vmatpush.msrb.mxu1 %v360_v46 }
  0xbe   :  { %v193_v49 = vmax.f32 %v191_v48, 0.0  ;;  %v358_v48 = vld [vmem:[#allocation13] sm:$0xff] }
  0xbf   :  { %392 = vmatpush.msrb.mxu1 %v359_v47 }
  0xc0   :  { %230 = vmatmul.f32.vlgmr.msra.gmra.mxu1 %v193_v49  ;;  %v433_v49 = vld [vmem:[%s787_s10] ss:$0 sm:$0xff] }
  0xc1   :  { %393 = vmatpush.msrb.mxu1 %v358_v48 }
 0x13d   :  { %v231_v3 = vpop.f32.mrf.mxu1 }
 0x13e   :  { %v232_v4 = vadd.f32 %v430_v2, %v231_v3 }
 0x140   :  { %v234_v5 = vmax.f32 %v232_v4, 0.0 }
 0x142   :  { %271 = vmatmul.f32.vlgmr.msra.gmra.mxu2 %v234_v5 }
 0x1c5   :  { %v272_v23 = vpop.f32.mrf.mxu2 }
 0x1c6   :  { %v273_v24 = vadd.f32 %v431_v22, %v272_v23 }
 0x1c8   :  { %v275_v25 = vmax.f32 %v273_v24, 0.0 }
 0x1ca   :  { %312 = vmatmul.f32.vlgmr.msra.gmra.mxu3 %v275_v25 }
 0x24d   :  { %v313_v43 = vpop.f32.mrf.mxu3 }
 0x24e   :  { %v314_v44 = vadd.f32 %v432_v42, %v313_v43 }
 0x250   :  { %v316_v45 = vmax.f32 %v314_v44, 0.0 }
 0x252   :  { %353 = vmatmul.f32.vlgmr.msrb.gmra.mxu0 %v316_v45 }
 0x2cf   :  { %v354_v50 = vpop.f32.mrf.mxu0 }
 0x2d0   :  { %v355_v51 = vadd.f32 %v433_v49, %v354_v50 }
 0x2d2   :  { %v357_v52 = vmax.f32 %v355_v51, 0.0 }
 0x2d4   :  { %394 = vmatmul.f32.vlgmr.msrb.gmra.mxu1 %v357_v52 }
 0x351   :  { %v395_v54 = vpop.f32.mrf.mxu1 }
 0x352   :  { %v396_v55 = vadd.f32 %v434_v53, %v395_v54 }
 0x354   :  { %398 = vst [vmem:[#allocation14] sm:$0xff] %v396_v55 }
 0x355   :  { %409 = dma.vmem_to_hbm [thread:$0]  %s405_s27, 128, %s407_s30, [#allocation4]  }
 0x356   :  { %635 = dma.done.wait [#allocation4], 128  }
 0x357   :  { %636 = vsyncadd [#allocation4], 4294967168 }
 0x358   :  { %414 = vsyncpa [#allocation3], 1 }
 0x359   :  { %415 = vsyncpa [#allocation6], 1 }
 0x35a   :  { %416 = vsyncpa [#allocation9], 1 }
 0x35b   :  { %417 = vsyncpa [#allocation12], 1 }
 0x35c   :  { %418 = vsyncpa [#allocation4], 1 }

</bundles_post_ra>
